<compile_context>
chip_gen: v5e
topology: v5e:2x2
jax: 0.10.0
libtpu: 0.0.40
codegen_flags: <defaults>
</compile_context>

<pallas_src>
import jax
import jax.numpy as jnp
from jax import lax
from jax.experimental import pallas as pl
from jax.experimental.pallas import tpu as pltpu


def _upsample_conv_kernel(xpad_ref, w_ref, b_ref, out_ref):
    """Fused nearest-x2 upsample + 3x3 conv for one row tile of one image.

    xpad_ref: (1, H+2, W+2, C)     zero-padded original-res image (resident)
    w_ref:    (2, 2, 2, 2, C, C)   phase-fused weights [py, px, ra, rb, ci, co]
    b_ref:    (1, C)               bias
    out_ref:  (1, 2, 2, tH, W, C)  per-phase outputs for this row tile
    """
    tH = out_ref.shape[3]
    W = out_ref.shape[4]
    C = out_ref.shape[5]

    r0 = pl.multiple_of(pl.program_id(1) * tH, tH)   # first original row of tile
    bias = b_ref[...]                                # (1, C)

    for py in range(2):
        for px in range(2):
            acc = jnp.zeros((tH * W, C), jnp.float32)
            # 4 taps per phase on the ORIGINAL-resolution input (MXU matmuls).
            for ra in range(2):
                for rb in range(2):
                    win = xpad_ref[0,
                                   pl.ds(r0 + py + ra, tH),
                                   pl.ds(px + rb, W),
                                   :]                         # (tH, W, C)
                    acc = acc + jnp.dot(
                        win.reshape(tH * W, C),
                        w_ref[py, px, ra, rb, :, :],
                        preferred_element_type=jnp.float32)
            acc = acc + bias
            out_ref[0, py, px, :, :, :] = acc.reshape(tH, W, C).astype(out_ref.dtype)


def _phase_weights(w_oihw):
    """(Cout,Cin,3,3) OIHW -> (2,2,2,2,Cin,Cout) phase-fused weights.

    For output pixel (2i+py, 2j+px), the 3x3 taps on the nearest-upsampled
    image collapse onto a 2x2 window of the original image; taps hitting the
    same source pixel are summed here (in the wrapper, once).
    """
    w = jnp.transpose(w_oihw, (2, 3, 1, 0))  # (3, 3, Cin, Cout)
    # groups[phase][tap] -> which of the 3 conv taps hit that source pixel
    groups = (((0,), (1, 2)), ((0, 1), (2,)))
    py_list = []
    for py in range(2):
        px_list = []
        for px in range(2):
            ra_list = []
            for ra in range(2):
                rb_list = []
                for rb in range(2):
                    acc = jnp.zeros_like(w[0, 0])
                    for dy in groups[py][ra]:
                        for dx in groups[px][rb]:
                            acc = acc + w[dy, dx]
                    rb_list.append(acc)
                ra_list.append(jnp.stack(rb_list, axis=0))
            px_list.append(jnp.stack(ra_list, axis=0))
        py_list.append(jnp.stack(px_list, axis=0))
    return jnp.stack(py_list, axis=0)  # (2, 2, 2, 2, Cin, Cout)


def _pick_tile_h(H, W, C, max_out_block_bytes=512 * 1024):
    """Largest row tile whose output block (and f32 accumulator) stays small."""
    best = 1
    for t in range(1, H + 1):
        if H % t:
            continue
        out_bytes = 2 * 2 * t * W * C * 4
        if out_bytes <= max_out_block_bytes:
            best = t
    # Prefer >= 2 row tiles so the second grid axis is non-trivial (v7x megacore).
    if best == H and H >= 16 and H % 2 == 0:
        best = H // 2
    return best


def upsample_conv_pallas(x_nchw, w_oihw, bias, *, tile_h=None):
    """Forward pass of the PyTorch `Upsample` module.

    Args:
      x_nchw: (N, C, H, W) float32
      w_oihw: (C, C, 3, 3) float32  (PyTorch Conv2d weight layout)
      bias:   (C,)         float32
    Returns:
      (N, C, 2H, 2W) float32
    """
    N, C, H, W = x_nchw.shape
    if tile_h is None:
        tile_h = _pick_tile_h(H, W, C)
    assert H % tile_h == 0
    n_row_tiles = H // tile_h

    # --- cheap glue at ORIGINAL resolution only (no 4x upsampled tensor) ---
    x_nhwc = jnp.transpose(x_nchw, (0, 2, 3, 1))            # (N, H, W, C)
    xpad = jnp.pad(x_nhwc, ((0, 0), (1, 1), (1, 1), (0, 0)))  # (N, H+2, W+2, C)
    wp = _phase_weights(w_oihw)                              # (2,2,2,2,C,C)
    b2d = bias.reshape(1, C)

    # --- explicit VMEM budget (fits easily in v5e/v6e/v7x scoped VMEM) ---
    in_block = (H + 2) * (W + 2) * C * 4
    w_bytes = 16 * C * C * 4
    b_bytes = C * 4
    out_block = 2 * 2 * tile_h * W * C * 4
    vmem_limit = 2 * (in_block + w_bytes + b_bytes + out_block) + (4 << 20)
    vmem_limit = int(min(vmem_limit, 48 << 20))

    out6 = pl.pallas_call(
        _upsample_conv_kernel,
        out_shape=jax.ShapeDtypeStruct((N, 2, 2, H, W, C), jnp.float32),
        grid_spec=pltpu.PrefetchScalarGridSpec(
            num_scalar_prefetch=0,
            grid=(N, n_row_tiles),
            in_specs=[
                # Padded original-res image: constant block index along the
                # row-tile axis -> DMA'd once per image, resident in VMEM.
                pl.BlockSpec((1, H + 2, W + 2, C), lambda n, i: (n, 0, 0, 0)),
                pl.BlockSpec((2, 2, 2, 2, C, C),
                             lambda n, i: (0, 0, 0, 0, 0, 0)),
                pl.BlockSpec((1, C), lambda n, i: (0, 0)),
            ],
            out_specs=pl.BlockSpec((1, 2, 2, tile_h, W, C),
                                   lambda n, i: (n, 0, 0, i, 0, 0)),
        ),
        compiler_params=pltpu.CompilerParams(
            dimension_semantics=("parallel", "parallel"),
            vmem_limit_bytes=vmem_limit,
        ),
    )(xpad, wp, b2d)

    # (N, py, px, i, j, c) -> (N, c, i, py, j, px) -> (N, C, 2H, 2W)
    # This single transpose replaces the NHWC->NCHW transpose the interface
    # needs anyway (same element count moved).
    out_nchw = jnp.transpose(out6, (0, 5, 3, 1, 4, 2)).reshape(N, C, 2 * H, 2 * W)
    return out_nchw


def _reference(x_nchw, w_oihw, bias):
    """Pure-JAX reference (nearest upsample x2 + 3x3 'same' conv), NCHW."""
    up = jnp.repeat(jnp.repeat(x_nchw, 2, axis=2), 2, axis=3)
    out = lax.conv_general_dilated(
        up, w_oihw,
        window_strides=(1, 1),
        padding=((1, 1), (1, 1)),
        dimension_numbers=("NCHW", "OIHW", "NCHW"),
    )
    return out + bias.reshape(1, -1, 1, 1)


if __name__ == "__main__":
    key = jax.random.PRNGKey(0)
    k_x, k_w, k_b = jax.random.split(key, 3)

    N, C, H, W = 2, 4, 16, 16
    x = jax.random.normal(k_x, (N, C, H, W), dtype=jnp.float32)

    # Deterministic synthetic Conv2d(in=C, out=C, kernel=3) parameters,
    # mimicking PyTorch's uniform(-1/sqrt(fan_in), 1/sqrt(fan_in)) init.
    fan_in = C * 3 * 3
    bound = 1.0 / (fan_in ** 0.5)
    w = jax.random.uniform(k_w, (C, C, 3, 3), jnp.float32, -bound, bound)
    b = jax.random.uniform(k_b, (C,), jnp.float32, -bound, bound)

    out = jax.jit(upsample_conv_pallas)(x, w, b)
    out = jax.block_until_ready(out)

    ref = _reference(x, w, b)
    assert out.shape == (N, C, 2 * H, 2 * W), out.shape
    assert jnp.allclose(out, ref, atol=1e-5, rtol=1e-5), (
        float(jnp.max(jnp.abs(out - ref)))
    )

    print("KERNEL_OK")
</pallas_src>

<mosaic_0001>
module attributes {stable_mosaic.version = 11 : i64} {
  func.func @_upsample_conv_kernel(%arg0: i32, %arg1: i32, %arg2: memref<1x18x18x4xf32, #tpu.memory_space<vmem>>, %arg3: memref<2x2x2x2x4x4xf32, #tpu.memory_space<vmem>>, %arg4: memref<1x4xf32, #tpu.memory_space<vmem>>, %arg5: memref<1x2x2x8x16x4xf32, #tpu.memory_space<vmem>>) attributes {dimension_semantics = [#tpu.dimension_semantics<parallel>, #tpu.dimension_semantics<parallel>], iteration_bounds = array<i64: 2, 2>, scalar_prefetch = 0 : i64, scratch_operands = 0 : i64, tpu.core_type = #tpu.core_type<tc>, window_params = [{transform_indices = @transform_0, window_bounds = array<i64: 1, 18, 18, 4>}, {pipeline_mode = #tpu.pipeline_mode<synchronous>, transform_indices = @transform_1, window_bounds = array<i64: 2, 2, 2, 2, 4, 4>}, {pipeline_mode = #tpu.pipeline_mode<synchronous>, transform_indices = @transform_2, window_bounds = array<i64: 1, 4>}, {transform_indices = @transform_3, window_bounds = array<i64: 1, 2, 2, 8, 16, 4>}]} {
    %c8_i32 = arith.constant 8 : i32
    %0 = arith.muli %arg1, %c8_i32 : i32
    %1 = tpu.assume_multiple %0, 8 : i32
    %c0 = arith.constant 0 : index
    %c0_0 = arith.constant 0 : index
    %2 = vector.load %arg4[%c0, %c0_0] : memref<1x4xf32, #tpu.memory_space<vmem>>, vector<1x4xf32>
    %cst = arith.constant 0.000000e+00 : f32
    %3 = vector.broadcast %cst : f32 to vector<128x4xf32>
    %c0_i32 = arith.constant 0 : i32
    %4 = arith.addi %1, %c0_i32 : i32
    %c0_i32_1 = arith.constant 0 : i32
    %5 = arith.addi %4, %c0_i32_1 : i32
    %c0_2 = arith.constant 0 : index
    %6 = arith.index_cast %5 : i32 to index
    %c0_3 = arith.constant 0 : index
    %c0_4 = arith.constant 0 : index
    %7 = vector.load %arg2[%c0_2, %6, %c0_3, %c0_4] : memref<1x18x18x4xf32, #tpu.memory_space<vmem>>, vector<1x8x16x4xf32>
    %8 = vector.shape_cast %7 : vector<1x8x16x4xf32> to vector<8x16x4xf32>
    %9 = vector.shape_cast %8 : vector<8x16x4xf32> to vector<128x4xf32>
    %c0_5 = arith.constant 0 : index
    %c0_6 = arith.constant 0 : index
    %c0_7 = arith.constant 0 : index
    %c0_8 = arith.constant 0 : index
    %c0_9 = arith.constant 0 : index
    %c0_10 = arith.constant 0 : index
    %10 = vector.load %arg3[%c0_5, %c0_6, %c0_7, %c0_8, %c0_9, %c0_10] : memref<2x2x2x2x4x4xf32, #tpu.memory_space<vmem>>, vector<1x1x1x1x4x4xf32>
    %11 = vector.shape_cast %10 : vector<1x1x1x1x4x4xf32> to vector<4x4xf32>
    %cst_11 = arith.constant dense<0.000000e+00> : vector<128x4xf32>
    %12 = tpu.matmul %9, %11, %cst_11 {dimension_numbers = #tpu.dot_dimension_numbers<[1], [0], [0], [1], [0, 0, 1, 1], [], []>} : vector<128x4xf32>, vector<4x4xf32>, vector<128x4xf32> -> vector<128x4xf32>
    %13 = arith.addf %3, %12 : vector<128x4xf32>
    %c0_i32_12 = arith.constant 0 : i32
    %14 = arith.addi %1, %c0_i32_12 : i32
    %c0_i32_13 = arith.constant 0 : i32
    %15 = arith.addi %14, %c0_i32_13 : i32
    %c0_14 = arith.constant 0 : index
    %16 = arith.index_cast %15 : i32 to index
    %c1 = arith.constant 1 : index
    %c0_15 = arith.constant 0 : index
    %17 = vector.load %arg2[%c0_14, %16, %c1, %c0_15] : memref<1x18x18x4xf32, #tpu.memory_space<vmem>>, vector<1x8x16x4xf32>
    %18 = vector.shape_cast %17 : vector<1x8x16x4xf32> to vector<8x16x4xf32>
    %19 = vector.shape_cast %18 : vector<8x16x4xf32> to vector<128x4xf32>
    %c0_16 = arith.constant 0 : index
    %c0_17 = arith.constant 0 : index
    %c0_18 = arith.constant 0 : index
    %c1_19 = arith.constant 1 : index
    %c0_20 = arith.constant 0 : index
    %c0_21 = arith.constant 0 : index
    %20 = vector.load %arg3[%c0_16, %c0_17, %c0_18, %c1_19, %c0_20, %c0_21] : memref<2x2x2x2x4x4xf32, #tpu.memory_space<vmem>>, vector<1x1x1x1x4x4xf32>
    %21 = vector.shape_cast %20 : vector<1x1x1x1x4x4xf32> to vector<4x4xf32>
    %cst_22 = arith.constant dense<0.000000e+00> : vector<128x4xf32>
    %22 = tpu.matmul %19, %21, %cst_22 {dimension_numbers = #tpu.dot_dimension_numbers<[1], [0], [0], [1], [0, 0, 1, 1], [], []>} : vector<128x4xf32>, vector<4x4xf32>, vector<128x4xf32> -> vector<128x4xf32>
    %23 = arith.addf %13, %22 : vector<128x4xf32>
    %c0_i32_23 = arith.constant 0 : i32
    %24 = arith.addi %1, %c0_i32_23 : i32
    %c1_i32 = arith.constant 1 : i32
    %25 = arith.addi %24, %c1_i32 : i32
    %c0_24 = arith.constant 0 : index
    %26 = arith.index_cast %25 : i32 to index
    %c0_25 = arith.constant 0 : index
    %c0_26 = arith.constant 0 : index
    %27 = vector.load %arg2[%c0_24, %26, %c0_25, %c0_26] : memref<1x18x18x4xf32, #tpu.memory_space<vmem>>, vector<1x8x16x4xf32>
    %28 = vector.shape_cast %27 : vector<1x8x16x4xf32> to vector<8x16x4xf32>
    %29 = vector.shape_cast %28 : vector<8x16x4xf32> to vector<128x4xf32>
    %c0_27 = arith.constant 0 : index
    %c0_28 = arith.constant 0 : index
    %c1_29 = arith.constant 1 : index
    %c0_30 = arith.constant 0 : index
    %c0_31 = arith.constant 0 : index
    %c0_32 = arith.constant 0 : index
    %30 = vector.load %arg3[%c0_27, %c0_28, %c1_29, %c0_30, %c0_31, %c0_32] : memref<2x2x2x2x4x4xf32, #tpu.memory_space<vmem>>, vector<1x1x1x1x4x4xf32>
    %31 = vector.shape_cast %30 : vector<1x1x1x1x4x4xf32> to vector<4x4xf32>
    %cst_33 = arith.constant dense<0.000000e+00> : vector<128x4xf32>
    %32 = tpu.matmul %29, %31, %cst_33 {dimension_numbers = #tpu.dot_dimension_numbers<[1], [0], [0], [1], [0, 0, 1, 1], [], []>} : vector<128x4xf32>, vector<4x4xf32>, vector<128x4xf32> -> vector<128x4xf32>
    %33 = arith.addf %23, %32 : vector<128x4xf32>
    %c0_i32_34 = arith.constant 0 : i32
    %34 = arith.addi %1, %c0_i32_34 : i32
    %c1_i32_35 = arith.constant 1 : i32
    %35 = arith.addi %34, %c1_i32_35 : i32
    %c0_36 = arith.constant 0 : index
    %36 = arith.index_cast %35 : i32 to index
    %c1_37 = arith.constant 1 : index
    %c0_38 = arith.constant 0 : index
    %37 = vector.load %arg2[%c0_36, %36, %c1_37, %c0_38] : memref<1x18x18x4xf32, #tpu.memory_space<vmem>>, vector<1x8x16x4xf32>
    %38 = vector.shape_cast %37 : vector<1x8x16x4xf32> to vector<8x16x4xf32>
    %39 = vector.shape_cast %38 : vector<8x16x4xf32> to vector<128x4xf32>
    %c0_39 = arith.constant 0 : index
    %c0_40 = arith.constant 0 : index
    %c1_41 = arith.constant 1 : index
    %c1_42 = arith.constant 1 : index
    %c0_43 = arith.constant 0 : index
    %c0_44 = arith.constant 0 : index
    %40 = vector.load %arg3[%c0_39, %c0_40, %c1_41, %c1_42, %c0_43, %c0_44] : memref<2x2x2x2x4x4xf32, #tpu.memory_space<vmem>>, vector<1x1x1x1x4x4xf32>
    %41 = vector.shape_cast %40 : vector<1x1x1x1x4x4xf32> to vector<4x4xf32>
    %cst_45 = arith.constant dense<0.000000e+00> : vector<128x4xf32>
    %42 = tpu.matmul %39, %41, %cst_45 {dimension_numbers = #tpu.dot_dimension_numbers<[1], [0], [0], [1], [0, 0, 1, 1], [], []>} : vector<128x4xf32>, vector<4x4xf32>, vector<128x4xf32> -> vector<128x4xf32>
    %43 = arith.addf %33, %42 : vector<128x4xf32>
    %44 = vector.broadcast %2 : vector<1x4xf32> to vector<128x4xf32>
    %45 = arith.addf %43, %44 : vector<128x4xf32>
    %46 = vector.shape_cast %45 : vector<128x4xf32> to vector<8x16x4xf32>
    %c0_46 = arith.constant 0 : index
    %c0_47 = arith.constant 0 : index
    %c0_48 = arith.constant 0 : index
    %c0_49 = arith.constant 0 : index
    %c0_50 = arith.constant 0 : index
    %c0_51 = arith.constant 0 : index
    %47 = vector.load %arg5[%c0_46, %c0_47, %c0_48, %c0_49, %c0_50, %c0_51] : memref<1x2x2x8x16x4xf32, #tpu.memory_space<vmem>>, vector<1x1x1x8x16x4xf32>
    %48 = vector.shape_cast %47 : vector<1x1x1x8x16x4xf32> to vector<8x16x4xf32>
    %49 = vector.shape_cast %46 : vector<8x16x4xf32> to vector<1x1x1x8x16x4xf32>
    tpu.vector_store %arg5[%c0_46, %c0_47, %c0_48, %c0_49, %c0_50, %c0_51], %49 {strides = array<i32>} : memref<1x2x2x8x16x4xf32, #tpu.memory_space<vmem>>, vector<1x1x1x8x16x4xf32>,
    %cst_52 = arith.constant 0.000000e+00 : f32
    %50 = vector.broadcast %cst_52 : f32 to vector<128x4xf32>
    %c0_i32_53 = arith.constant 0 : i32
    %51 = arith.addi %1, %c0_i32_53 : i32
    %c0_i32_54 = arith.constant 0 : i32
    %52 = arith.addi %51, %c0_i32_54 : i32
    %c0_55 = arith.constant 0 : index
    %53 = arith.index_cast %52 : i32 to index
    %c1_56 = arith.constant 1 : index
    %c0_57 = arith.constant 0 : index
    %54 = vector.load %arg2[%c0_55, %53, %c1_56, %c0_57] : memref<1x18x18x4xf32, #tpu.memory_space<vmem>>, vector<1x8x16x4xf32>
    %55 = vector.shape_cast %54 : vector<1x8x16x4xf32> to vector<8x16x4xf32>
    %56 = vector.shape_cast %55 : vector<8x16x4xf32> to vector<128x4xf32>
    %c0_58 = arith.constant 0 : index
    %c1_59 = arith.constant 1 : index
    %c0_60 = arith.constant 0 : index
    %c0_61 = arith.constant 0 : index
    %c0_62 = arith.constant 0 : index
    %c0_63 = arith.constant 0 : index
    %57 = vector.load %arg3[%c0_58, %c1_59, %c0_60, %c0_61, %c0_62, %c0_63] : memref<2x2x2x2x4x4xf32, #tpu.memory_space<vmem>>, vector<1x1x1x1x4x4xf32>
    %58 = vector.shape_cast %57 : vector<1x1x1x1x4x4xf32> to vector<4x4xf32>
    %cst_64 = arith.constant dense<0.000000e+00> : vector<128x4xf32>
    %59 = tpu.matmul %56, %58, %cst_64 {dimension_numbers = #tpu.dot_dimension_numbers<[1], [0], [0], [1], [0, 0, 1, 1], [], []>} : vector<128x4xf32>, vector<4x4xf32>, vector<128x4xf32> -> vector<128x4xf32>
    %60 = arith.addf %50, %59 : vector<128x4xf32>
    %c0_i32_65 = arith.constant 0 : i32
    %61 = arith.addi %1, %c0_i32_65 : i32
    %c0_i32_66 = arith.constant 0 : i32
    %62 = arith.addi %61, %c0_i32_66 : i32
    %c0_67 = arith.constant 0 : index
    %63 = arith.index_cast %62 : i32 to index
    %c2 = arith.constant 2 : index
    %c0_68 = arith.constant 0 : index
    %64 = vector.load %arg2[%c0_67, %63, %c2, %c0_68] : memref<1x18x18x4xf32, #tpu.memory_space<vmem>>, vector<1x8x16x4xf32>
    %65 = vector.shape_cast %64 : vector<1x8x16x4xf32> to vector<8x16x4xf32>
    %66 = vector.shape_cast %65 : vector<8x16x4xf32> to vector<128x4xf32>
    %c0_69 = arith.constant 0 : index
    %c1_70 = arith.constant 1 : index
    %c0_71 = arith.constant 0 : index
    %c1_72 = arith.constant 1 : index
    %c0_73 = arith.constant 0 : index
    %c0_74 = arith.constant 0 : index
    %67 = vector.load %arg3[%c0_69, %c1_70, %c0_71, %c1_72, %c0_73, %c0_74] : memref<2x2x2x2x4x4xf32, #tpu.memory_space<vmem>>, vector<1x1x1x1x4x4xf32>
    %68 = vector.shape_cast %67 : vector<1x1x1x1x4x4xf32> to vector<4x4xf32>
    %cst_75 = arith.constant dense<0.000000e+00> : vector<128x4xf32>
    %69 = tpu.matmul %66, %68, %cst_75 {dimension_numbers = #tpu.dot_dimension_numbers<[1], [0], [0], [1], [0, 0, 1, 1], [], []>} : vector<128x4xf32>, vector<4x4xf32>, vector<128x4xf32> -> vector<128x4xf32>
    %70 = arith.addf %60, %69 : vector<128x4xf32>
    %c0_i32_76 = arith.constant 0 : i32
    %71 = arith.addi %1, %c0_i32_76 : i32
    %c1_i32_77 = arith.constant 1 : i32
    %72 = arith.addi %71, %c1_i32_77 : i32
    %c0_78 = arith.constant 0 : index
    %73 = arith.index_cast %72 : i32 to index
    %c1_79 = arith.constant 1 : index
    %c0_80 = arith.constant 0 : index
    %74 = vector.load %arg2[%c0_78, %73, %c1_79, %c0_80] : memref<1x18x18x4xf32, #tpu.memory_space<vmem>>, vector<1x8x16x4xf32>
    %75 = vector.shape_cast %74 : vector<1x8x16x4xf32> to vector<8x16x4xf32>
    %76 = vector.shape_cast %75 : vector<8x16x4xf32> to vector<128x4xf32>
    %c0_81 = arith.constant 0 : index
    %c1_82 = arith.constant 1 : index
    %c1_83 = arith.constant 1 : index
    %c0_84 = arith.constant 0 : index
    %c0_85 = arith.constant 0 : index
    %c0_86 = arith.constant 0 : index
    %77 = vector.load %arg3[%c0_81, %c1_82, %c1_83, %c0_84, %c0_85, %c0_86] : memref<2x2x2x2x4x4xf32, #tpu.memory_space<vmem>>, vector<1x1x1x1x4x4xf32>
    %78 = vector.shape_cast %77 : vector<1x1x1x1x4x4xf32> to vector<4x4xf32>
    %cst_87 = arith.constant dense<0.000000e+00> : vector<128x4xf32>
    %79 = tpu.matmul %76, %78, %cst_87 {dimension_numbers = #tpu.dot_dimension_numbers<[1], [0], [0], [1], [0, 0, 1, 1], [], []>} : vector<128x4xf32>, vector<4x4xf32>, vector<128x4xf32> -> vector<128x4xf32>
    %80 = arith.addf %70, %79 : vector<128x4xf32>
    %c0_i32_88 = arith.constant 0 : i32
    %81 = arith.addi %1, %c0_i32_88 : i32
    %c1_i32_89 = arith.constant 1 : i32
    %82 = arith.addi %81, %c1_i32_89 : i32
    %c0_90 = arith.constant 0 : index
    %83 = arith.index_cast %82 : i32 to index
    %c2_91 = arith.constant 2 : index
    %c0_92 = arith.constant 0 : index
    %84 = vector.load %arg2[%c0_90, %83, %c2_91, %c0_92] : memref<1x18x18x4xf32, #tpu.memory_space<vmem>>, vector<1x8x16x4xf32>
    %85 = vector.shape_cast %84 : vector<1x8x16x4xf32> to vector<8x16x4xf32>
    %86 = vector.shape_cast %85 : vector<8x16x4xf32> to vector<128x4xf32>
    %c0_93 = arith.constant 0 : index
    %c1_94 = arith.constant 1 : index
    %c1_95 = arith.constant 1 : index
    %c1_96 = arith.constant 1 : index
    %c0_97 = arith.constant 0 : index
    %c0_98 = arith.constant 0 : index
    %87 = vector.load %arg3[%c0_93, %c1_94, %c1_95, %c1_96, %c0_97, %c0_98] : memref<2x2x2x2x4x4xf32, #tpu.memory_space<vmem>>, vector<1x1x1x1x4x4xf32>
    %88 = vector.shape_cast %87 : vector<1x1x1x1x4x4xf32> to vector<4x4xf32>
    %cst_99 = arith.constant dense<0.000000e+00> : vector<128x4xf32>
    %89 = tpu.matmul %86, %88, %cst_99 {dimension_numbers = #tpu.dot_dimension_numbers<[1], [0], [0], [1], [0, 0, 1, 1], [], []>} : vector<128x4xf32>, vector<4x4xf32>, vector<128x4xf32> -> vector<128x4xf32>
    %90 = arith.addf %80, %89 : vector<128x4xf32>
    %91 = vector.broadcast %2 : vector<1x4xf32> to vector<128x4xf32>
    %92 = arith.addf %90, %91 : vector<128x4xf32>
    %93 = vector.shape_cast %92 : vector<128x4xf32> to vector<8x16x4xf32>
    %c0_100 = arith.constant 0 : index
    %c0_101 = arith.constant 0 : index
    %c1_102 = arith.constant 1 : index
    %c0_103 = arith.constant 0 : index
    %c0_104 = arith.constant 0 : index
    %c0_105 = arith.constant 0 : index
    %94 = vector.load %arg5[%c0_100, %c0_101, %c1_102, %c0_103, %c0_104, %c0_105] : memref<1x2x2x8x16x4xf32, #tpu.memory_space<vmem>>, vector<1x1x1x8x16x4xf32>
    %95 = vector.shape_cast %94 : vector<1x1x1x8x16x4xf32> to vector<8x16x4xf32>
    %96 = vector.shape_cast %93 : vector<8x16x4xf32> to vector<1x1x1x8x16x4xf32>
    tpu.vector_store %arg5[%c0_100, %c0_101, %c1_102, %c0_103, %c0_104, %c0_105], %96 {strides = array<i32>} : memref<1x2x2x8x16x4xf32, #tpu.memory_space<vmem>>, vector<1x1x1x8x16x4xf32>,
    %cst_106 = arith.constant 0.000000e+00 : f32
    %97 = vector.broadcast %cst_106 : f32 to vector<128x4xf32>
    %c1_i32_107 = arith.constant 1 : i32
    %98 = arith.addi %1, %c1_i32_107 : i32
    %c0_i32_108 = arith.constant 0 : i32
    %99 = arith.addi %98, %c0_i32_108 : i32
    %c0_109 = arith.constant 0 : index
    %100 = arith.index_cast %99 : i32 to index
    %c0_110 = arith.constant 0 : index
    %c0_111 = arith.constant 0 : index
    %101 = vector.load %arg2[%c0_109, %100, %c0_110, %c0_111] : memref<1x18x18x4xf32, #tpu.memory_space<vmem>>, vector<1x8x16x4xf32>
    %102 = vector.shape_cast %101 : vector<1x8x16x4xf32> to vector<8x16x4xf32>
    %103 = vector.shape_cast %102 : vector<8x16x4xf32> to vector<128x4xf32>
    %c1_112 = arith.constant 1 : index
    %c0_113 = arith.constant 0 : index
    %c0_114 = arith.constant 0 : index
    %c0_115 = arith.constant 0 : index
    %c0_116 = arith.constant 0 : index
    %c0_117 = arith.constant 0 : index
    %104 = vector.load %arg3[%c1_112, %c0_113, %c0_114, %c0_115, %c0_116, %c0_117] : memref<2x2x2x2x4x4xf32, #tpu.memory_space<vmem>>, vector<1x1x1x1x4x4xf32>
    %105 = vector.shape_cast %104 : vector<1x1x1x1x4x4xf32> to vector<4x4xf32>
    %cst_118 = arith.constant dense<0.000000e+00> : vector<128x4xf32>
    %106 = tpu.matmul %103, %105, %cst_118 {dimension_numbers = #tpu.dot_dimension_numbers<[1], [0], [0], [1], [0, 0, 1, 1], [], []>} : vector<128x4xf32>, vector<4x4xf32>, vector<128x4xf32> -> vector<128x4xf32>
    %107 = arith.addf %97, %106 : vector<128x4xf32>
    %c1_i32_119 = arith.constant 1 : i32
    %108 = arith.addi %1, %c1_i32_119 : i32
    %c0_i32_120 = arith.constant 0 : i32
    %109 = arith.addi %108, %c0_i32_120 : i32
    %c0_121 = arith.constant 0 : index
    %110 = arith.index_cast %109 : i32 to index
    %c1_122 = arith.constant 1 : index
    %c0_123 = arith.constant 0 : index
    %111 = vector.load %arg2[%c0_121, %110, %c1_122, %c0_123] : memref<1x18x18x4xf32, #tpu.memory_space<vmem>>, vector<1x8x16x4xf32>
    %112 = vector.shape_cast %111 : vector<1x8x16x4xf32> to vector<8x16x4xf32>
    %113 = vector.shape_cast %112 : vector<8x16x4xf32> to vector<128x4xf32>
    %c1_124 = arith.constant 1 : index
    %c0_125 = arith.constant 0 : index
    %c0_126 = arith.constant 0 : index
    %c1_127 = arith.constant 1 : index
    %c0_128 = arith.constant 0 : index
    %c0_129 = arith.constant 0 : index
    %114 = vector.load %arg3[%c1_124, %c0_125, %c0_126, %c1_127, %c0_128, %c0_129] : memref<2x2x2x2x4x4xf32, #tpu.memory_space<vmem>>, vector<1x1x1x1x4x4xf32>
    %115 = vector.shape_cast %114 : vector<1x1x1x1x4x4xf32> to vector<4x4xf32>
    %cst_130 = arith.constant dense<0.000000e+00> : vector<128x4xf32>
    %116 = tpu.matmul %113, %115, %cst_130 {dimension_numbers = #tpu.dot_dimension_numbers<[1], [0], [0], [1], [0, 0, 1, 1], [], []>} : vector<128x4xf32>, vector<4x4xf32>, vector<128x4xf32> -> vector<128x4xf32>
    %117 = arith.addf %107, %116 : vector<128x4xf32>
    %c1_i32_131 = arith.constant 1 : i32
    %118 = arith.addi %1, %c1_i32_131 : i32
    %c1_i32_132 = arith.constant 1 : i32
    %119 = arith.addi %118, %c1_i32_132 : i32
    %c0_133 = arith.constant 0 : index
    %120 = arith.index_cast %119 : i32 to index
    %c0_134 = arith.constant 0 : index
    %c0_135 = arith.constant 0 : index
    %121 = vector.load %arg2[%c0_133, %120, %c0_134, %c0_135] : memref<1x18x18x4xf32, #tpu.memory_space<vmem>>, vector<1x8x16x4xf32>
    %122 = vector.shape_cast %121 : vector<1x8x16x4xf32> to vector<8x16x4xf32>
    %123 = vector.shape_cast %122 : vector<8x16x4xf32> to vector<128x4xf32>
    %c1_136 = arith.constant 1 : index
    %c0_137 = arith.constant 0 : index
    %c1_138 = arith.constant 1 : index
    %c0_139 = arith.constant 0 : index
    %c0_140 = arith.constant 0 : index
    %c0_141 = arith.constant 0 : index
    %124 = vector.load %arg3[%c1_136, %c0_137, %c1_138, %c0_139, %c0_140, %c0_141] : memref<2x2x2x2x4x4xf32, #tpu.memory_space<vmem>>, vector<1x1x1x1x4x4xf32>
    %125 = vector.shape_cast %124 : vector<1x1x1x1x4x4xf32> to vector<4x4xf32>
    %cst_142 = arith.constant dense<0.000000e+00> : vector<128x4xf32>
    %126 = tpu.matmul %123, %125, %cst_142 {dimension_numbers = #tpu.dot_dimension_numbers<[1], [0], [0], [1], [0, 0, 1, 1], [], []>} : vector<128x4xf32>, vector<4x4xf32>, vector<128x4xf32> -> vector<128x4xf32>
    %127 = arith.addf %117, %126 : vector<128x4xf32>
    %c1_i32_143 = arith.constant 1 : i32
    %128 = arith.addi %1, %c1_i32_143 : i32
    %c1_i32_144 = arith.constant 1 : i32
    %129 = arith.addi %128, %c1_i32_144 : i32
    %c0_145 = arith.constant 0 : index
    %130 = arith.index_cast %129 : i32 to index
    %c1_146 = arith.constant 1 : index
    %c0_147 = arith.constant 0 : index
    %131 = vector.load %arg2[%c0_145, %130, %c1_146, %c0_147] : memref<1x18x18x4xf32, #tpu.memory_space<vmem>>, vector<1x8x16x4xf32>
    %132 = vector.shape_cast %131 : vector<1x8x16x4xf32> to vector<8x16x4xf32>
    %133 = vector.shape_cast %132 : vector<8x16x4xf32> to vector<128x4xf32>
    %c1_148 = arith.constant 1 : index
    %c0_149 = arith.constant 0 : index
    %c1_150 = arith.constant 1 : index
    %c1_151 = arith.constant 1 : index
    %c0_152 = arith.constant 0 : index
    %c0_153 = arith.constant 0 : index
    %134 = vector.load %arg3[%c1_148, %c0_149, %c1_150, %c1_151, %c0_152, %c0_153] : memref<2x2x2x2x4x4xf32, #tpu.memory_space<vmem>>, vector<1x1x1x1x4x4xf32>
    %135 = vector.shape_cast %134 : vector<1x1x1x1x4x4xf32> to vector<4x4xf32>
    %cst_154 = arith.constant dense<0.000000e+00> : vector<128x4xf32>
    %136 = tpu.matmul %133, %135, %cst_154 {dimension_numbers = #tpu.dot_dimension_numbers<[1], [0], [0], [1], [0, 0, 1, 1], [], []>} : vector<128x4xf32>, vector<4x4xf32>, vector<128x4xf32> -> vector<128x4xf32>
    %137 = arith.addf %127, %136 : vector<128x4xf32>
    %138 = vector.broadcast %2 : vector<1x4xf32> to vector<128x4xf32>
    %139 = arith.addf %137, %138 : vector<128x4xf32>
    %140 = vector.shape_cast %139 : vector<128x4xf32> to vector<8x16x4xf32>
    %c0_155 = arith.constant 0 : index
    %c1_156 = arith.constant 1 : index
    %c0_157 = arith.constant 0 : index
    %c0_158 = arith.constant 0 : index
    %c0_159 = arith.constant 0 : index
    %c0_160 = arith.constant 0 : index
    %141 = vector.load %arg5[%c0_155, %c1_156, %c0_157, %c0_158, %c0_159, %c0_160] : memref<1x2x2x8x16x4xf32, #tpu.memory_space<vmem>>, vector<1x1x1x8x16x4xf32>
    %142 = vector.shape_cast %141 : vector<1x1x1x8x16x4xf32> to vector<8x16x4xf32>
    %143 = vector.shape_cast %140 : vector<8x16x4xf32> to vector<1x1x1x8x16x4xf32>
    tpu.vector_store %arg5[%c0_155, %c1_156, %c0_157, %c0_158, %c0_159, %c0_160], %143 {strides = array<i32>} : memref<1x2x2x8x16x4xf32, #tpu.memory_space<vmem>>, vector<1x1x1x8x16x4xf32>,
    %cst_161 = arith.constant 0.000000e+00 : f32
    %144 = vector.broadcast %cst_161 : f32 to vector<128x4xf32>
    %c1_i32_162 = arith.constant 1 : i32
    %145 = arith.addi %1, %c1_i32_162 : i32
    %c0_i32_163 = arith.constant 0 : i32
    %146 = arith.addi %145, %c0_i32_163 : i32
    %c0_164 = arith.constant 0 : index
    %147 = arith.index_cast %146 : i32 to index
    %c1_165 = arith.constant 1 : index
    %c0_166 = arith.constant 0 : index
    %148 = vector.load %arg2[%c0_164, %147, %c1_165, %c0_166] : memref<1x18x18x4xf32, #tpu.memory_space<vmem>>, vector<1x8x16x4xf32>
    %149 = vector.shape_cast %148 : vector<1x8x16x4xf32> to vector<8x16x4xf32>
    %150 = vector.shape_cast %149 : vector<8x16x4xf32> to vector<128x4xf32>
    %c1_167 = arith.constant 1 : index
    %c1_168 = arith.constant 1 : index
    %c0_169 = arith.constant 0 : index
    %c0_170 = arith.constant 0 : index
    %c0_171 = arith.constant 0 : index
    %c0_172 = arith.constant 0 : index
    %151 = vector.load %arg3[%c1_167, %c1_168, %c0_169, %c0_170, %c0_171, %c0_172] : memref<2x2x2x2x4x4xf32, #tpu.memory_space<vmem>>, vector<1x1x1x1x4x4xf32>
    %152 = vector.shape_cast %151 : vector<1x1x1x1x4x4xf32> to vector<4x4xf32>
    %cst_173 = arith.constant dense<0.000000e+00> : vector<128x4xf32>
    %153 = tpu.matmul %150, %152, %cst_173 {dimension_numbers = #tpu.dot_dimension_numbers<[1], [0], [0], [1], [0, 0, 1, 1], [], []>} : vector<128x4xf32>, vector<4x4xf32>, vector<128x4xf32> -> vector<128x4xf32>
    %154 = arith.addf %144, %153 : vector<128x4xf32>
    %c1_i32_174 = arith.constant 1 : i32
    %155 = arith.addi %1, %c1_i32_174 : i32
    %c0_i32_175 = arith.constant 0 : i32
    %156 = arith.addi %155, %c0_i32_175 : i32
    %c0_176 = arith.constant 0 : index
    %157 = arith.index_cast %156 : i32 to index
    %c2_177 = arith.constant 2 : index
    %c0_178 = arith.constant 0 : index
    %158 = vector.load %arg2[%c0_176, %157, %c2_177, %c0_178] : memref<1x18x18x4xf32, #tpu.memory_space<vmem>>, vector<1x8x16x4xf32>
    %159 = vector.shape_cast %158 : vector<1x8x16x4xf32> to vector<8x16x4xf32>
    %160 = vector.shape_cast %159 : vector<8x16x4xf32> to vector<128x4xf32>
    %c1_179 = arith.constant 1 : index
    %c1_180 = arith.constant 1 : index
    %c0_181 = arith.constant 0 : index
    %c1_182 = arith.constant 1 : index
    %c0_183 = arith.constant 0 : index
    %c0_184 = arith.constant 0 : index
    %161 = vector.load %arg3[%c1_179, %c1_180, %c0_181, %c1_182, %c0_183, %c0_184] : memref<2x2x2x2x4x4xf32, #tpu.memory_space<vmem>>, vector<1x1x1x1x4x4xf32>
    %162 = vector.shape_cast %161 : vector<1x1x1x1x4x4xf32> to vector<4x4xf32>
    %cst_185 = arith.constant dense<0.000000e+00> : vector<128x4xf32>
    %163 = tpu.matmul %160, %162, %cst_185 {dimension_numbers = #tpu.dot_dimension_numbers<[1], [0], [0], [1], [0, 0, 1, 1], [], []>} : vector<128x4xf32>, vector<4x4xf32>, vector<128x4xf32> -> vector<128x4xf32>
    %164 = arith.addf %154, %163 : vector<128x4xf32>
    %c1_i32_186 = arith.constant 1 : i32
    %165 = arith.addi %1, %c1_i32_186 : i32
    %c1_i32_187 = arith.constant 1 : i32
    %166 = arith.addi %165, %c1_i32_187 : i32
    %c0_188 = arith.constant 0 : index
    %167 = arith.index_cast %166 : i32 to index
    %c1_189 = arith.constant 1 : index
    %c0_190 = arith.constant 0 : index
    %168 = vector.load %arg2[%c0_188, %167, %c1_189, %c0_190] : memref<1x18x18x4xf32, #tpu.memory_space<vmem>>, vector<1x8x16x4xf32>
    %169 = vector.shape_cast %168 : vector<1x8x16x4xf32> to vector<8x16x4xf32>
    %170 = vector.shape_cast %169 : vector<8x16x4xf32> to vector<128x4xf32>
    %c1_191 = arith.constant 1 : index
    %c1_192 = arith.constant 1 : index
    %c1_193 = arith.constant 1 : index
    %c0_194 = arith.constant 0 : index
    %c0_195 = arith.constant 0 : index
    %c0_196 = arith.constant 0 : index
    %171 = vector.load %arg3[%c1_191, %c1_192, %c1_193, %c0_194, %c0_195, %c0_196] : memref<2x2x2x2x4x4xf32, #tpu.memory_space<vmem>>, vector<1x1x1x1x4x4xf32>
    %172 = vector.shape_cast %171 : vector<1x1x1x1x4x4xf32> to vector<4x4xf32>
    %cst_197 = arith.constant dense<0.000000e+00> : vector<128x4xf32>
    %173 = tpu.matmul %170, %172, %cst_197 {dimension_numbers = #tpu.dot_dimension_numbers<[1], [0], [0], [1], [0, 0, 1, 1], [], []>} : vector<128x4xf32>, vector<4x4xf32>, vector<128x4xf32> -> vector<128x4xf32>
    %174 = arith.addf %164, %173 : vector<128x4xf32>
    %c1_i32_198 = arith.constant 1 : i32
    %175 = arith.addi %1, %c1_i32_198 : i32
    %c1_i32_199 = arith.constant 1 : i32
    %176 = arith.addi %175, %c1_i32_199 : i32
    %c0_200 = arith.constant 0 : index
    %177 = arith.index_cast %176 : i32 to index
    %c2_201 = arith.constant 2 : index
    %c0_202 = arith.constant 0 : index
    %178 = vector.load %arg2[%c0_200, %177, %c2_201, %c0_202] : memref<1x18x18x4xf32, #tpu.memory_space<vmem>>, vector<1x8x16x4xf32>
    %179 = vector.shape_cast %178 : vector<1x8x16x4xf32> to vector<8x16x4xf32>
    %180 = vector.shape_cast %179 : vector<8x16x4xf32> to vector<128x4xf32>
    %c1_203 = arith.constant 1 : index
    %c1_204 = arith.constant 1 : index
    %c1_205 = arith.constant 1 : index
    %c1_206 = arith.constant 1 : index
    %c0_207 = arith.constant 0 : index
    %c0_208 = arith.constant 0 : index
    %181 = vector.load %arg3[%c1_203, %c1_204, %c1_205, %c1_206, %c0_207, %c0_208] : memref<2x2x2x2x4x4xf32, #tpu.memory_space<vmem>>, vector<1x1x1x1x4x4xf32>
    %182 = vector.shape_cast %181 : vector<1x1x1x1x4x4xf32> to vector<4x4xf32>
    %cst_209 = arith.constant dense<0.000000e+00> : vector<128x4xf32>
    %183 = tpu.matmul %180, %182, %cst_209 {dimension_numbers = #tpu.dot_dimension_numbers<[1], [0], [0], [1], [0, 0, 1, 1], [], []>} : vector<128x4xf32>, vector<4x4xf32>, vector<128x4xf32> -> vector<128x4xf32>
    %184 = arith.addf %174, %183 : vector<128x4xf32>
    %185 = vector.broadcast %2 : vector<1x4xf32> to vector<128x4xf32>
    %186 = arith.addf %184, %185 : vector<128x4xf32>
    %187 = vector.shape_cast %186 : vector<128x4xf32> to vector<8x16x4xf32>
    %c0_210 = arith.constant 0 : index
    %c1_211 = arith.constant 1 : index
    %c1_212 = arith.constant 1 : index
    %c0_213 = arith.constant 0 : index
    %c0_214 = arith.constant 0 : index
    %c0_215 = arith.constant 0 : index
    %188 = vector.load %arg5[%c0_210, %c1_211, %c1_212, %c0_213, %c0_214, %c0_215] : memref<1x2x2x8x16x4xf32, #tpu.memory_space<vmem>>, vector<1x1x1x8x16x4xf32>
    %189 = vector.shape_cast %188 : vector<1x1x1x8x16x4xf32> to vector<8x16x4xf32>
    %190 = vector.shape_cast %187 : vector<8x16x4xf32> to vector<1x1x1x8x16x4xf32>
    tpu.vector_store %arg5[%c0_210, %c1_211, %c1_212, %c0_213, %c0_214, %c0_215], %190 {strides = array<i32>} : memref<1x2x2x8x16x4xf32, #tpu.memory_space<vmem>>, vector<1x1x1x8x16x4xf32>,
    return
  }
  func.func @transform_0(%arg0: i32, %arg1: i32) -> (i32, i32, i32, i32) {
    %c0_i32 = arith.constant 0 : i32
    %c0_i32_0 = arith.constant 0 : i32
    %c0_i32_1 = arith.constant 0 : i32
    %c0_i32_2 = arith.constant 0 : i32
    return %arg0, %c0_i32, %c0_i32_0, %c0_i32_1 : i32, i32, i32, i32
  }
  func.func @transform_1(%arg0: i32, %arg1: i32) -> (i32, i32, i32, i32, i32, i32) {
    %c0_i32 = arith.constant 0 : i32
    %c0_i32_0 = arith.constant 0 : i32
    %c0_i32_1 = arith.constant 0 : i32
    %c0_i32_2 = arith.constant 0 : i32
    %c0_i32_3 = arith.constant 0 : i32
    %c0_i32_4 = arith.constant 0 : i32
    %c0_i32_5 = arith.constant 0 : i32
    return %c0_i32, %c0_i32_0, %c0_i32_1, %c0_i32_2, %c0_i32_3, %c0_i32_4 : i32, i32, i32, i32, i32, i32
  }
  func.func @transform_2(%arg0: i32, %arg1: i32) -> (i32, i32) {
    %c0_i32 = arith.constant 0 : i32
    %c0_i32_0 = arith.constant 0 : i32
    %c0_i32_1 = arith.constant 0 : i32
    return %c0_i32, %c0_i32_0 : i32, i32
  }
  func.func @transform_3(%arg0: i32, %arg1: i32) -> (i32, i32, i32, i32, i32, i32) {
    %c0_i32 = arith.constant 0 : i32
    %c0_i32_0 = arith.constant 0 : i32
    %c0_i32_1 = arith.constant 0 : i32
    %c0_i32_2 = arith.constant 0 : i32
    %c0_i32_3 = arith.constant 0 : i32
    return %arg0, %c0_i32, %c0_i32_0, %arg1, %c0_i32_1, %c0_i32_2 : i32, i32, i32, i32, i32, i32
  }
}

</mosaic_0001>

<bundles_post_ra>
// kernel: upsample_conv_pallas.1
= control target key start
LH: loop header
LB: loop body
LE: loop exit
PB: predicated region body
PF: predicated region fallthrough
CT: control target
= control target key end

     0   :  { %s3653_s12 = smov 0   ;;  %s3655_s13 = smov 0   ;;  %s4741_s0 = inlined_call_operand.vmem [shape: f32[2,18,18,4], index: 0, kind: input, shape index: {}]   ;;  %s4742_s1 = inlined_call_operand.vmem [shape: f32[2,2,2,2,4,4], index: 1, kind: input, shape index: {}]   ;;  %s4743_s2 = inlined_call_operand.vmem [shape: f32[1,4], index: 2, kind: input, shape index: {}]   ;;  %s4744_s3 = inlined_call_operand.vmem [shape: f32[2,2,2,16,16,4], index: 3, kind: output, shape index: {}]  }
   0x1   :  { %s3657_s14 = smov 0   ;;  %s3659_s15 = smov 0  }
   0x2   :  { %s3661_s16 = smov 0   ;;  %s3663_s17 = smov 0  }
   0x3   :  { %s3665_s18 = smov 0  }
   0x4 LB: > { %s22_s19 = sadd.s32 1, %s3623_s16  ;;  %s25_s20 = sadd.s32 1, %s3627_s17  ;;  %s3631_s18 = sphi %s3665_s18, %s13_s18   ;;  %s3627_s17 = sphi %s3663_s17, %s4751_s17   ;;  %s3623_s16 = sphi %s3661_s16, %s4750_s16   ;;  %s3619_s15 = sphi %s3659_s15, %s4749_s15   ;;  %s3615_s14 = sphi %s3657_s14, %s4748_s14   ;;  %s3611_s13 = sphi %s3655_s13, %s4747_s13   ;;  %s3607_s12 = sphi %s3653_s12, %s4746_s12  }
   0x5   : > { %p23_p0 = scmp.ge.s32.totalorder %s22_s19, 2  ;;  %s2970_s21 = sadd.s32 4294967295, %s3631_s18  }
   0x6   : > { %p112_p1 = scmp.ne.s32.totalorder %s3611_s13, %s3607_s12  ;;  %p113_p2 = scmp.eq.s32.totalorder %s2970_s21, 3 }
   0x7   : > { %s4753_s19 = smov (%p23_p0, %s22_s19), 0  ;;  %s4755_s20 = smov (!%p23_p0, %s25_s20), %s3627_s17 }
   0x8   : > { %s98_s22 = ssub.s32 %s3623_s16, %s4753_s19  ;;  %p27_p3 = scmp.ge.s32.totalorder %s4755_s20, 2 }
   0x9   : > { %p2974_p4 = scmp.ge.s32.totalorder %s3631_s18, 1  ;;  %p3699_p5 = por %p113_p2, %p112_p1 }
   0xa   : > { %p151_p6 = scmp.lt.s32.totalorder %s3631_s18, 5  ;;  %s4757_s20 = smov (%p27_p3, %s4755_s20), 0 }
   0xb   : > { %s97_s24 = ssub.s32 %s3627_s17, %s4757_s20  ;;  %s102_s26 = sadd.s32 1, %s3611_s13 }
   0xc   : > { %p152_p7 = pnand %p2974_p4, %p151_p6  ;;  %s99_s25 = sor.u32 %s98_s22, %s97_s24 }
   0xd   : > { %p100_p8 = scmp.eq.s32.totalorder %s99_s25, 0  ;;  %p174_p9 = scmp.lt.s32.totalorder (!%p152_p7), %s3619_s15, 1 }
   0xe   : > { %155 = sbr.rel (%p152_p7) target bundleno = 679 (0x2a7), region = 32 }
   0xf   : > { %s3710_s27 = scalar_select %p100_p8, %s3611_s13, %s102_s26  }
  0x10   : > { %s2978_s30 = smul.u32 (!%p152_p7), 192, %s3615_s14  ;;  %s171_s26 = sand.u32 (!%p152_p7), 1, %s3607_s12  }
  0x11   : > { %s2975_s28 = sshll.u32 (!%p152_p7), %s171_s26, 9 }
  0x12   : > { %s4015_s12 = scalar_lea.vmem (!%p152_p7), [#allocation2], %s2975_s28 }
  0x13   : > { %vm268_vm0 = vcmask 1043456   ;;  %v3032_v0 = vld [vmem:[%s4742_s1 + $0x8] sm:$0xf]  ;;  %v3136_v1 = vld [vmem:[%s4742_s1 + $0x18] sm:$0xf]  ;;  %s175_s10 = scalar_select %p174_p9, %s3619_s15, 1 }
  0x14   : > { %3033 = vmatpush.msk.msra.mxu2 %vm268_vm0, %v3032_v0  ;;  %v3066_v2 = vld [vmem:[%s4742_s1 + $0xc] sm:$0xf]  ;;  %v3170_v3 = vld [vmem:[%s4742_s1 + $0x1c] sm:$0xf]  ;;  %v2979_v4 = vld [vmem:[%s4742_s1 + $0x4] sm:$0xf] }
  0x15   : > { %3067 = vmatpush.msk.msra.mxu3 %vm268_vm0, %v3066_v2  ;;  %v200_v5 = vld [vmem:[%s4742_s1] sm:$0xf]  ;;  %2980 = vmatpush.msk.msra.mxu0 %vm268_vm0, %v2979_v4  ;;  %v3085_v6 = vld [vmem:[%s4742_s1 + $0x14] sm:$0xf]  ;;  %v3084_v7 = vld [vmem:[%s4742_s1 + $0x10] sm:$0xf] }
  0x16   : > { %3137 = vmatpush.msk.msrb.mxu2 %vm268_vm0, %v3136_v1  ;;  %s3518_s4 = smul.u32 432, %s175_s10  ;;  %2997 = vmatpush.msk.msra.mxu1 %vm268_vm0, %v200_v5  ;;  %vm219_vm1 = vcmask 31744   ;;  %v3290_v38 = vld [vmem:[%s4742_s1 + $0x28] sm:$0xf]  ;;  %v3324_v39 = vld [vmem:[%s4742_s1 + $0x2c] sm:$0xf] }
  0x17   : > { %3171 = vmatpush.msk.msrb.mxu3 %vm268_vm0, %v3170_v3  ;;  %3086 = vmatpush.msk.msrb.mxu0 %vm268_vm0, %v3085_v6  ;;  %v3237_v40 = vld [vmem:[%s4742_s1 + $0x24] sm:$0xf]  ;;  %v3220_v41 = vld [vmem:[%s4742_s1 + $0x20] sm:$0xf]  ;;  %s3513_s25 = sshll.u32 (%p3699_p5), %s3619_s15, 7 }
  0x18   : > { %3103 = vmatpush.msk.msrb.mxu1 %vm268_vm0, %v3084_v7  ;;  %s178_s7 = scalar_lea.vmem %s4741_s0, %s3518_s4  ;;  %v4004_v56 = vld [vmem:[%s4743_s2] ss:$0 sm:$0xff] }
  0x19   : > { %s3750_s8 = scalar_lea.vmem %s178_s7, %s2978_s30 }
  0x1a   : > { %v3753_v8 = vld [vmem:[%s3750_s8 + $0x18] sm:$0xff]  ;;  %v3759_v10 = vld [vmem:[%s3750_s8 + $0x1] sm:$0xff]  ;;  %v3776_v14 = vld [vmem:[%s3750_s8 + $0x9] sm:$0xff] }
  0x1b   : > { %v3756_v9 = vld [vmem:[%s3750_s8 + $0x19] sm:$0xff]  ;;  %3034 = vmatmul.msk.f32.vlgmr.msra.gmra.mxu2 %vm219_vm1, %v3753_v8  ;;  %2981 = vmatmul.msk.f32.vlgmr.msra.gmra.mxu0 %vm219_vm1, %v3759_v10  ;;  %v3773_v13 = vld [vmem:[%s3750_s8 + $0x21] sm:$0xff]  ;;  %v3787_v16 = vld [vmem:[%s3750_s8 + $0x30] sm:$0xff] }
  0x1c   : > { %3068 = vmatmul.msk.f32.vlgmr.msra.gmra.mxu3 %vm219_vm1, %v3756_v9  ;;  %v184_v11 = vld [vmem:[%s3750_s8] sm:$0xff]  ;;  %v185_v15 = vld [vmem:[%s3750_s8 + $0x8] sm:$0xff]  ;;  %v3790_v17 = vld [vmem:[%s3750_s8 + $0x31] sm:$0xff]  ;;  %3291 = vmatpush.msk.msra.mxu2 %vm268_vm0, %v3290_v38 }
  0x1d   : > { %2998 = vmatmul.msk.f32.vlgmr.msra.gmra.mxu1 %vm219_vm1, %v184_v11  ;;  %v3770_v12 = vld [vmem:[%s3750_s8 + $0x20] sm:$0xff]  ;;  %v3801_v18 = vld [vmem:[%s3750_s8 + $0x38] sm:$0xff]  ;;  %v3815_v20 = vld [vmem:[%s3750_s8 + $0x48] sm:$0xff]  ;;  %3325 = vmatpush.msk.msra.mxu3 %vm268_vm0, %v3324_v39 }
  0x1e   : > { %v3804_v19 = vld [vmem:[%s3750_s8 + $0x39] sm:$0xff]  ;;  %v3818_v21 = vld [vmem:[%s3750_s8 + $0x49] sm:$0xff]  ;;  %v3832_v23 = vld [vmem:[%s3750_s8 + $0x51] sm:$0xff]  ;;  %3238 = vmatpush.msk.msra.mxu0 %vm268_vm0, %v3237_v40  ;;  %3255 = vmatpush.msk.msra.mxu1 %vm268_vm0, %v3220_v41 }
  0x1f   : > { %v3829_v22 = vld [vmem:[%s3750_s8 + $0x50] sm:$0xff]  ;;  %v3843_v24 = vld [vmem:[%s3750_s8 + $0x60] sm:$0xff]  ;;  %v3857_v26 = vld [vmem:[%s3750_s8 + $0x68] sm:$0xff] }
  0x20   : > { %v3846_v25 = vld [vmem:[%s3750_s8 + $0x61] sm:$0xff]  ;;  %v3860_v27 = vld [vmem:[%s3750_s8 + $0x69] sm:$0xff]  ;;  %v3871_v28 = vld [vmem:[%s3750_s8 + $0x78] sm:$0xff] }
  0x21   : > { %v3874_v29 = vld [vmem:[%s3750_s8 + $0x79] sm:$0xff]  ;;  %v3888_v31 = vld [vmem:[%s3750_s8 + $0x81] sm:$0xff]  ;;  %v3899_v32 = vld [vmem:[%s3750_s8 + $0x90] sm:$0xff] }
  0x22   : > { %v3885_v30 = vld [vmem:[%s3750_s8 + $0x80] sm:$0xff]  ;;  %v3902_v33 = vld [vmem:[%s3750_s8 + $0x91] sm:$0xff]  ;;  %v3927_v36 = vld [vmem:[%s3750_s8 + $0xa8] sm:$0xff] }
  0x23   : > { %3035 = vmatmul.msk.f32.gmra.mxu2 %vm219_vm1, %v3770_v12  ;;  %2982 = vmatmul.msk.f32.gmra.mxu0 %vm219_vm1, %v3776_v14  ;;  %v3913_v34 = vld [vmem:[%s3750_s8 + $0x98] sm:$0xff]  ;;  %v3930_v37 = vld [vmem:[%s3750_s8 + $0xa9] sm:$0xff]  ;;  %v3030_v44 = vld [vmem:[%s3750_s8 + $0xc0] sm:$0xff] }
  0x24   : > { %3069 = vmatmul.msk.f32.gmra.mxu3 %vm219_vm1, %v3773_v13  ;;  %v3916_v35 = vld [vmem:[%s3750_s8 + $0x99] sm:$0xff]  ;;  %v3955_v42 = vld [vmem:[%s3750_s8 + $0xb0] sm:$0xff]  ;;  %v3972_v45 = vld [vmem:[%s3750_s8 + $0xc1] sm:$0xff] }
  0x25   : > { %2999 = vmatmul.msk.f32.gmra.mxu1 %vm219_vm1, %v185_v15  ;;  %v3958_v43 = vld [vmem:[%s3750_s8 + $0xb1] sm:$0xff]  ;;  %v3031_v46 = vld [vmem:[%s3750_s8 + $0xc8] sm:$0xff]  ;;  %v3154_v48 = vld [vmem:[%s3750_s8 + $0x1a] sm:$0xff] }
  0x26   : > { %v3983_v47 = vld [vmem:[%s3750_s8 + $0xc9] sm:$0xff]  ;;  %v3156_v3 = vld [vmem:[%s3750_s8 + $0x32] sm:$0xff]  ;;  %v3157_v38 = vld [vmem:[%s3750_s8 + $0x3a] sm:$0xff] }
  0x27   : > { %v809_v51 = vld [vmem:[%s3750_s8 + $0x2] sm:$0xff]  ;;  %v810_v61 = vld [vmem:[%s3750_s8 + $0xa] sm:$0xff] }
  0x28   : > { %v3155_v57 = vld [vmem:[%s3750_s8 + $0x22] sm:$0xff] }
  0x2b   : > { %3036 = vmatmul.msk.f32.gmra.mxu2 %vm219_vm1, %v3787_v16  ;;  %2983 = vmatmul.msk.f32.gmra.mxu0 %vm219_vm1, %v3756_v9 }
  0x2c   : > { %3070 = vmatmul.msk.f32.gmra.mxu3 %vm219_vm1, %v3790_v17 }
  0x2d   : > { %3000 = vmatmul.msk.f32.gmra.mxu1 %vm219_vm1, %v3753_v8 }
  0x33   : > { %3037 = vmatmul.msk.f32.gmra.mxu2 %vm219_vm1, %v3801_v18  ;;  %2984 = vmatmul.msk.f32.gmra.mxu0 %vm219_vm1, %v3773_v13 }
  0x34   : > { %3071 = vmatmul.msk.f32.gmra.mxu3 %vm219_vm1, %v3804_v19 }
  0x35   : > { %3001 = vmatmul.msk.f32.gmra.mxu1 %vm219_vm1, %v3770_v12 }
  0x3b   : > { %3038 = vmatmul.msk.f32.gmra.mxu2 %vm219_vm1, %v3815_v20  ;;  %2985 = vmatmul.msk.f32.gmra.mxu0 %vm219_vm1, %v3790_v17 }
  0x3c   : > { %3072 = vmatmul.msk.f32.gmra.mxu3 %vm219_vm1, %v3818_v21 }
  0x3d   : > { %3002 = vmatmul.msk.f32.gmra.mxu1 %vm219_vm1, %v3787_v16 }
  0x43   : > { %3039 = vmatmul.msk.f32.gmra.mxu2 %vm219_vm1, %v3829_v22  ;;  %2986 = vmatmul.msk.f32.gmra.mxu0 %vm219_vm1, %v3804_v19 }
  0x44   : > { %3073 = vmatmul.msk.f32.gmra.mxu3 %vm219_vm1, %v3832_v23 }
  0x45   : > { %3003 = vmatmul.msk.f32.gmra.mxu1 %vm219_vm1, %v3801_v18 }
  0x4b   : > { %3040 = vmatmul.msk.f32.gmra.mxu2 %vm219_vm1, %v3843_v24  ;;  %2987 = vmatmul.msk.f32.gmra.mxu0 %vm219_vm1, %v3818_v21 }
  0x4c   : > { %3074 = vmatmul.msk.f32.gmra.mxu3 %vm219_vm1, %v3846_v25 }
  0x4d   : > { %3004 = vmatmul.msk.f32.gmra.mxu1 %vm219_vm1, %v3815_v20 }
  0x53   : > { %3041 = vmatmul.msk.f32.gmra.mxu2 %vm219_vm1, %v3857_v26  ;;  %2988 = vmatmul.msk.f32.gmra.mxu0 %vm219_vm1, %v3832_v23 }
  0x54   : > { %3075 = vmatmul.msk.f32.gmra.mxu3 %vm219_vm1, %v3860_v27 }
  0x55   : > { %3005 = vmatmul.msk.f32.gmra.mxu1 %vm219_vm1, %v3829_v22 }
  0x5b   : > { %3042 = vmatmul.msk.f32.gmra.mxu2 %vm219_vm1, %v3871_v28  ;;  %2989 = vmatmul.msk.f32.gmra.mxu0 %vm219_vm1, %v3846_v25 }
  0x5c   : > { %3076 = vmatmul.msk.f32.gmra.mxu3 %vm219_vm1, %v3874_v29 }
  0x5d   : > { %3006 = vmatmul.msk.f32.gmra.mxu1 %vm219_vm1, %v3843_v24 }
  0x63   : > { %3043 = vmatmul.msk.f32.gmra.mxu2 %vm219_vm1, %v3885_v30  ;;  %2990 = vmatmul.msk.f32.gmra.mxu0 %vm219_vm1, %v3860_v27 }
  0x64   : > { %3077 = vmatmul.msk.f32.gmra.mxu3 %vm219_vm1, %v3888_v31 }
  0x65   : > { %3007 = vmatmul.msk.f32.gmra.mxu1 %vm219_vm1, %v3857_v26 }
  0x6b   : > { %3044 = vmatmul.msk.f32.gmra.mxu2 %vm219_vm1, %v3899_v32  ;;  %2991 = vmatmul.msk.f32.gmra.mxu0 %vm219_vm1, %v3874_v29 }
  0x6c   : > { %3078 = vmatmul.msk.f32.gmra.mxu3 %vm219_vm1, %v3902_v33 }
  0x6d   : > { %3008 = vmatmul.msk.f32.gmra.mxu1 %vm219_vm1, %v3871_v28 }
  0x73   : > { %3045 = vmatmul.msk.f32.gmra.mxu2 %vm219_vm1, %v3913_v34  ;;  %2992 = vmatmul.msk.f32.gmra.mxu0 %vm219_vm1, %v3888_v31 }
  0x74   : > { %3079 = vmatmul.msk.f32.gmra.mxu3 %vm219_vm1, %v3916_v35 }
  0x75   : > { %3009 = vmatmul.msk.f32.gmra.mxu1 %vm219_vm1, %v3885_v30 }
  0x7b   : > { %3046 = vmatmul.msk.f32.gmra.mxu2 %vm219_vm1, %v3927_v36  ;;  %2993 = vmatmul.msk.f32.gmra.mxu0 %vm219_vm1, %v3902_v33 }
  0x7c   : > { %3080 = vmatmul.msk.f32.gmra.mxu3 %vm219_vm1, %v3930_v37 }
  0x7d   : > { %3010 = vmatmul.msk.f32.gmra.mxu1 %vm219_vm1, %v3899_v32 }
  0x83   : > { %3047 = vmatmul.msk.f32.gmra.mxu2 %vm219_vm1, %v3955_v42  ;;  %2994 = vmatmul.msk.f32.gmra.mxu0 %vm219_vm1, %v3916_v35 }
  0x84   : > { %3081 = vmatmul.msk.f32.gmra.mxu3 %vm219_vm1, %v3958_v43 }
  0x85   : > { %3011 = vmatmul.msk.f32.gmra.mxu1 %vm219_vm1, %v3913_v34 }
  0x8b   : > { %3048 = vmatmul.msk.f32.gmra.mxu2 %vm219_vm1, %v3030_v44  ;;  %2995 = vmatmul.msk.f32.gmra.mxu0 %vm219_vm1, %v3930_v37 }
  0x8c   : > { %3082 = vmatmul.msk.f32.gmra.mxu3 %vm219_vm1, %v3972_v45 }
  0x8d   : > { %3012 = vmatmul.msk.f32.gmra.mxu1 %vm219_vm1, %v3927_v36 }
  0x93   : > { %3049 = vmatmul.msk.f32.gmra.mxu2 %vm219_vm1, %v3031_v46  ;;  %2996 = vmatmul.msk.f32.gmra.mxu0 %vm219_vm1, %v3958_v43 }
  0x94   : > { %3083 = vmatmul.msk.f32.gmra.mxu3 %vm219_vm1, %v3983_v47 }
  0x95   : > { %3013 = vmatmul.msk.f32.gmra.mxu1 %vm219_vm1, %v3955_v42 }
  0x98   : > { %v289_v49 = vpop.f32.mrf.mxu0 }
  0x9a   : > { %v405_v50 = vpop.f32.mrf.mxu1 }
  0x9b   : > { %3138 = vmatmul.msk.f32.vlgmr.msrb.gmra.mxu2 %vm219_vm1, %v3756_v9  ;;  %v406_v52 = vadd.f32 %v405_v50, %v289_v49  ;;  %3087 = vmatmul.msk.f32.vlgmr.msrb.gmra.mxu0 %vm219_vm1, %v809_v51  ;;  %v3158_v51 = vld [vmem:[%s3750_s8 + $0x4a] sm:$0xff] }
  0x9c   : > { %3172 = vmatmul.msk.f32.vlgmr.msrb.gmra.mxu3 %vm219_vm1, %v3154_v48 }
  0x9d   : > { %3104 = vmatmul.msk.f32.vlgmr.msrb.gmra.mxu1 %vm219_vm1, %v3759_v10 }
  0x9e   : > { %v542_v53 = vpop.f32.mrf.mxu2 }
  0x9f   : > { %v692_v54 = vpop.f32.mrf.mxu3  ;;  %v590_v55 = vadd.f32 %v542_v53, %v406_v52 }
  0xa0   : > { %v292_v59 = vpop.f32.mrf.mxu0 }
  0xa1   : > { %v740_v58 = vadd.f32 %v692_v54, %v590_v55 }
  0xa2   : > { %v408_v60 = vpop.f32.mrf.mxu1 }
  0xa3   : > { %v759_v62 = vadd.f32 %v4004_v56, %v740_v58  ;;  %3139 = vmatmul.msk.f32.gmra.mxu2 %vm219_vm1, %v3773_v13  ;;  %v409_v63 = vadd.f32 %v408_v60, %v292_v59  ;;  %3088 = vmatmul.msk.f32.gmra.mxu0 %vm219_vm1, %v810_v61  ;;  %v3159_v61 = vld [vmem:[%s3750_s8 + $0x52] sm:$0xff] }
  0xa4   : > { %3173 = vmatmul.msk.f32.gmra.mxu3 %vm219_vm1, %v3155_v57 }
  0xa5   : > { %3105 = vmatmul.msk.f32.gmra.mxu1 %vm219_vm1, %v3776_v14  ;;  %775 = vst.msk [vmem:[%s4015_s12] sm:$0xff] %vm219_vm1, %v759_v62 }
  0xa6   : > { %v545_v0 = vpop.f32.mrf.mxu2 }
  0xa7   : > { %v695_v1 = vpop.f32.mrf.mxu3  ;;  %v591_v2 = vadd.f32 %v545_v0, %v409_v63 }
  0xa8   : > { %v295_v5 = vpop.f32.mrf.mxu0 }
  0xa9   : > { %v741_v4 = vadd.f32 %v695_v1, %v591_v2 }
  0xaa   : > { %v411_v6 = vpop.f32.mrf.mxu1 }
  0xab   : > { %v760_v7 = vadd.f32 %v4004_v56, %v741_v4  ;;  %3140 = vmatmul.msk.f32.gmra.mxu2 %vm219_vm1, %v3790_v17  ;;  %v412_v10 = vadd.f32 %v411_v6, %v295_v5  ;;  %3089 = vmatmul.msk.f32.gmra.mxu0 %vm219_vm1, %v3154_v48  ;;  %v3160_v6 = vld [vmem:[%s3750_s8 + $0x62] sm:$0xff] }
  0xac   : > { %3174 = vmatmul.msk.f32.gmra.mxu3 %vm219_vm1, %v3156_v3 }
  0xad   : > { %3106 = vmatmul.msk.f32.gmra.mxu1 %vm219_vm1, %v3756_v9  ;;  %776 = vst.msk [vmem:[%s4015_s12 + $0x8] sm:$0xff] %vm219_vm1, %v760_v7 }
  0xae   : > { %v548_v11 = vpop.f32.mrf.mxu2 }
  0xaf   : > { %v698_v14 = vpop.f32.mrf.mxu3  ;;  %v592_v15 = vadd.f32 %v548_v11, %v412_v10 }
  0xb0   : > { %v298_v40 = vpop.f32.mrf.mxu0 }
  0xb1   : > { %v742_v39 = vadd.f32 %v698_v14, %v592_v15 }
  0xb2   : > { %v414_v41 = vpop.f32.mrf.mxu1 }
  0xb3   : > { %v761_v44 = vadd.f32 %v4004_v56, %v742_v39  ;;  %3141 = vmatmul.msk.f32.gmra.mxu2 %vm219_vm1, %v3804_v19  ;;  %v415_v46 = vadd.f32 %v414_v41, %v298_v40  ;;  %3090 = vmatmul.msk.f32.gmra.mxu0 %vm219_vm1, %v3155_v57  ;;  %v3161_v41 = vld [vmem:[%s3750_s8 + $0x6a] sm:$0xff] }
  0xb4   : > { %3175 = vmatmul.msk.f32.gmra.mxu3 %vm219_vm1, %v3157_v38 }
  0xb5   : > { %3107 = vmatmul.msk.f32.gmra.mxu1 %vm219_vm1, %v3773_v13  ;;  %777 = vst.msk [vmem:[%s4015_s12 + $0x10] sm:$0xff] %vm219_vm1, %v761_v44 }
  0xb6   : > { %v551_v48 = vpop.f32.mrf.mxu2 }
  0xb7   : > { %v701_v49 = vpop.f32.mrf.mxu3  ;;  %v593_v50 = vadd.f32 %v551_v48, %v415_v46 }
  0xb8   : > { %v301_v53 = vpop.f32.mrf.mxu0 }
  0xb9   : > { %v743_v52 = vadd.f32 %v701_v49, %v593_v50 }
  0xba   : > { %v417_v54 = vpop.f32.mrf.mxu1 }
  0xbb   : > { %v762_v55 = vadd.f32 %v4004_v56, %v743_v52  ;;  %3142 = vmatmul.msk.f32.gmra.mxu2 %vm219_vm1, %v3818_v21  ;;  %v418_v57 = vadd.f32 %v417_v54, %v301_v53  ;;  %3091 = vmatmul.msk.f32.gmra.mxu0 %vm219_vm1, %v3156_v3  ;;  %v3162_v54 = vld [vmem:[%s3750_s8 + $0x7a] sm:$0xff] }
  0xbc   : > { %3176 = vmatmul.msk.f32.gmra.mxu3 %vm219_vm1, %v3158_v51 }
  0xbd   : > { %3108 = vmatmul.msk.f32.gmra.mxu1 %vm219_vm1, %v3790_v17  ;;  %778 = vst.msk [vmem:[%s4015_s12 + $0x18] sm:$0xff] %vm219_vm1, %v762_v55 }
  0xbe   : > { %v554_v58 = vpop.f32.mrf.mxu2 }
  0xbf   : > { %v704_v59 = vpop.f32.mrf.mxu3  ;;  %v594_v60 = vadd.f32 %v554_v58, %v418_v57 }
  0xc0   : > { %v304_v63 = vpop.f32.mrf.mxu0 }
  0xc1   : > { %v744_v62 = vadd.f32 %v704_v59, %v594_v60 }
  0xc2   : > { %v420_v0 = vpop.f32.mrf.mxu1 }
  0xc3   : > { %v763_v1 = vadd.f32 %v4004_v56, %v744_v62  ;;  %3143 = vmatmul.msk.f32.gmra.mxu2 %vm219_vm1, %v3832_v23  ;;  %v421_v2 = vadd.f32 %v420_v0, %v304_v63  ;;  %3092 = vmatmul.msk.f32.gmra.mxu0 %vm219_vm1, %v3157_v38  ;;  %v3163_v0 = vld [vmem:[%s3750_s8 + $0x82] sm:$0xff] }
  0xc4   : > { %3177 = vmatmul.msk.f32.gmra.mxu3 %vm219_vm1, %v3159_v61 }
  0xc5   : > { %3109 = vmatmul.msk.f32.gmra.mxu1 %vm219_vm1, %v3804_v19  ;;  %779 = vst.msk [vmem:[%s4015_s12 + $0x20] sm:$0xff] %vm219_vm1, %v763_v1 }
  0xc6   : > { %v557_v3 = vpop.f32.mrf.mxu2 }
  0xc7   : > { %v707_v4 = vpop.f32.mrf.mxu3  ;;  %v595_v5 = vadd.f32 %v557_v3, %v421_v2 }
  0xc8   : > { %v307_v10 = vpop.f32.mrf.mxu0 }
  0xc9   : > { %v745_v7 = vadd.f32 %v707_v4, %v595_v5 }
  0xca   : > { %v423_v11 = vpop.f32.mrf.mxu1 }
  0xcb   : > { %v764_v14 = vadd.f32 %v4004_v56, %v745_v7  ;;  %3144 = vmatmul.msk.f32.gmra.mxu2 %vm219_vm1, %v3846_v25  ;;  %v424_v15 = vadd.f32 %v423_v11, %v307_v10  ;;  %3093 = vmatmul.msk.f32.gmra.mxu0 %vm219_vm1, %v3158_v51  ;;  %v3164_v11 = vld [vmem:[%s3750_s8 + $0x92] sm:$0xff] }
  0xcc   : > { %3178 = vmatmul.msk.f32.gmra.mxu3 %vm219_vm1, %v3160_v6 }
  0xcd   : > { %3110 = vmatmul.msk.f32.gmra.mxu1 %vm219_vm1, %v3818_v21  ;;  %780 = vst.msk [vmem:[%s4015_s12 + $0x28] sm:$0xff] %vm219_vm1, %v764_v14 }
  0xce   : > { %v560_v38 = vpop.f32.mrf.mxu2 }
  0xcf   : > { %v710_v39 = vpop.f32.mrf.mxu3  ;;  %v596_v40 = vadd.f32 %v560_v38, %v424_v15 }
  0xd0   : > { %v310_v46 = vpop.f32.mrf.mxu0 }
  0xd1   : > { %v746_v44 = vadd.f32 %v710_v39, %v596_v40 }
  0xd2   : > { %v426_v48 = vpop.f32.mrf.mxu1 }
  0xd3   : > { %v765_v49 = vadd.f32 %v4004_v56, %v746_v44  ;;  %3145 = vmatmul.msk.f32.gmra.mxu2 %vm219_vm1, %v3860_v27  ;;  %v427_v50 = vadd.f32 %v426_v48, %v310_v46  ;;  %3094 = vmatmul.msk.f32.gmra.mxu0 %vm219_vm1, %v3159_v61  ;;  %v3165_v48 = vld [vmem:[%s3750_s8 + $0x9a] sm:$0xff] }
  0xd4   : > { %3179 = vmatmul.msk.f32.gmra.mxu3 %vm219_vm1, %v3161_v41 }
  0xd5   : > { %3111 = vmatmul.msk.f32.gmra.mxu1 %vm219_vm1, %v3832_v23  ;;  %781 = vst.msk [vmem:[%s4015_s12 + $0x30] sm:$0xff] %vm219_vm1, %v765_v49 }
  0xd6   : > { %v563_v51 = vpop.f32.mrf.mxu2 }
  0xd7   : > { %v713_v52 = vpop.f32.mrf.mxu3  ;;  %v597_v53 = vadd.f32 %v563_v51, %v427_v50 }
  0xd8   : > { %v313_v57 = vpop.f32.mrf.mxu0 }
  0xd9   : > { %v747_v55 = vadd.f32 %v713_v52, %v597_v53 }
  0xda   : > { %v429_v58 = vpop.f32.mrf.mxu1 }
  0xdb   : > { %v766_v59 = vadd.f32 %v4004_v56, %v747_v55  ;;  %3146 = vmatmul.msk.f32.gmra.mxu2 %vm219_vm1, %v3874_v29  ;;  %v430_v60 = vadd.f32 %v429_v58, %v313_v57  ;;  %3095 = vmatmul.msk.f32.gmra.mxu0 %vm219_vm1, %v3160_v6  ;;  %v3166_v58 = vld [vmem:[%s3750_s8 + $0xaa] sm:$0xff] }
  0xdc   : > { %3180 = vmatmul.msk.f32.gmra.mxu3 %vm219_vm1, %v3162_v54 }
  0xdd   : > { %3112 = vmatmul.msk.f32.gmra.mxu1 %vm219_vm1, %v3846_v25  ;;  %782 = vst.msk [vmem:[%s4015_s12 + $0x38] sm:$0xff] %vm219_vm1, %v766_v59 }
  0xde   : > { %v566_v61 = vpop.f32.mrf.mxu2 }
  0xdf   : > { %v716_v62 = vpop.f32.mrf.mxu3  ;;  %v598_v63 = vadd.f32 %v566_v61, %v430_v60 }
  0xe0   : > { %v316_v2 = vpop.f32.mrf.mxu0 }
  0xe1   : > { %v748_v1 = vadd.f32 %v716_v62, %v598_v63 }
  0xe2   : > { %v432_v3 = vpop.f32.mrf.mxu1 }
  0xe3   : > { %v767_v4 = vadd.f32 %v4004_v56, %v748_v1  ;;  %3147 = vmatmul.msk.f32.gmra.mxu2 %vm219_vm1, %v3888_v31  ;;  %v433_v5 = vadd.f32 %v432_v3, %v316_v2  ;;  %3096 = vmatmul.msk.f32.gmra.mxu0 %vm219_vm1, %v3161_v41  ;;  %v3476_v1 = vld [vmem:[%s4742_s1 + $0x3c] sm:$0xf] }
  0xe4   : > { %3181 = vmatmul.msk.f32.gmra.mxu3 %vm219_vm1, %v3163_v0 }
  0xe5   : > { %3113 = vmatmul.msk.f32.gmra.mxu1 %vm219_vm1, %v3860_v27  ;;  %783 = vst.msk [vmem:[%s4015_s12 + $0x40] sm:$0xff] %vm219_vm1, %v767_v4  ;;  %3477 = vmatpush.msk.msrb.mxu3 %vm268_vm0, %v3476_v1 }
  0xe6   : > { %v569_v6 = vpop.f32.mrf.mxu2 }
  0xe7   : > { %v719_v7 = vpop.f32.mrf.mxu3  ;;  %v599_v10 = vadd.f32 %v569_v6, %v433_v5  ;;  %v3391_v5 = vld [vmem:[%s4742_s1 + $0x34] sm:$0xf]  ;;  %v3374_v6 = vld [vmem:[%s4742_s1 + $0x30] sm:$0xf] }
  0xe8   : > { %v319_v15 = vpop.f32.mrf.mxu0  ;;  %3392 = vmatpush.msk.msrb.mxu0 %vm268_vm0, %v3391_v5  ;;  %3409 = vmatpush.msk.msrb.mxu1 %vm268_vm0, %v3374_v6 }
  0xe9   : > { %v749_v14 = vadd.f32 %v719_v7, %v599_v10  ;;  %v3167_v7 = vld [vmem:[%s3750_s8 + $0xb2] sm:$0xff] }
  0xea   : > { %v435_v38 = vpop.f32.mrf.mxu1 }
  0xeb   : > { %v768_v39 = vadd.f32 %v4004_v56, %v749_v14  ;;  %3148 = vmatmul.msk.f32.gmra.mxu2 %vm219_vm1, %v3902_v33  ;;  %v436_v40 = vadd.f32 %v435_v38, %v319_v15  ;;  %3097 = vmatmul.msk.f32.gmra.mxu0 %vm219_vm1, %v3162_v54 }
  0xec   : > { %3182 = vmatmul.msk.f32.gmra.mxu3 %vm219_vm1, %v3164_v11 }
  0xed   : > { %3114 = vmatmul.msk.f32.gmra.mxu1 %vm219_vm1, %v3874_v29  ;;  %784 = vst.msk [vmem:[%s4015_s12 + $0x48] sm:$0xff] %vm219_vm1, %v768_v39 }
  0xee   : > { %v572_v41 = vpop.f32.mrf.mxu2 }
  0xef   : > { %v722_v44 = vpop.f32.mrf.mxu3  ;;  %v600_v46 = vadd.f32 %v572_v41, %v436_v40 }
  0xf0   : > { %v322_v50 = vpop.f32.mrf.mxu0 }
  0xf1   : > { %v750_v49 = vadd.f32 %v722_v44, %v600_v46  ;;  %v3168_v44 = vld [vmem:[%s3750_s8 + $0xc2] sm:$0xff] }
  0xf2   : > { %v438_v51 = vpop.f32.mrf.mxu1 }
  0xf3   : > { %v769_v52 = vadd.f32 %v4004_v56, %v750_v49  ;;  %3149 = vmatmul.msk.f32.gmra.mxu2 %vm219_vm1, %v3916_v35  ;;  %v439_v53 = vadd.f32 %v438_v51, %v322_v50  ;;  %3098 = vmatmul.msk.f32.gmra.mxu0 %vm219_vm1, %v3163_v0  ;;  %v3442_v0 = vld [vmem:[%s4742_s1 + $0x38] sm:$0xf] }
  0xf4   : > { %3183 = vmatmul.msk.f32.gmra.mxu3 %vm219_vm1, %v3165_v48  ;;  %3443 = vmatpush.msk.msrb.mxu2 %vm268_vm0, %v3442_v0 }
  0xf5   : > { %3115 = vmatmul.msk.f32.gmra.mxu1 %vm219_vm1, %v3888_v31  ;;  %785 = vst.msk [vmem:[%s4015_s12 + $0x50] sm:$0xff] %vm219_vm1, %v769_v52 }
  0xf6   : > { %v575_v54 = vpop.f32.mrf.mxu2 }
  0xf7   : > { %v725_v55 = vpop.f32.mrf.mxu3  ;;  %v601_v57 = vadd.f32 %v575_v54, %v439_v53 }
  0xf8   : > { %v325_v60 = vpop.f32.mrf.mxu0 }
  0xf9   : > { %v751_v59 = vadd.f32 %v725_v55, %v601_v57  ;;  %v3169_v55 = vld [vmem:[%s3750_s8 + $0xca] sm:$0xff] }
  0xfa   : > { %v441_v61 = vpop.f32.mrf.mxu1 }
  0xfb   : > { %v770_v62 = vadd.f32 %v4004_v56, %v751_v59  ;;  %3150 = vmatmul.msk.f32.gmra.mxu2 %vm219_vm1, %v3930_v37  ;;  %v442_v63 = vadd.f32 %v441_v61, %v325_v60  ;;  %3099 = vmatmul.msk.f32.gmra.mxu0 %vm219_vm1, %v3164_v11 }
  0xfc   : > { %3184 = vmatmul.msk.f32.gmra.mxu3 %vm219_vm1, %v3166_v58 }
  0xfd   : > { %3116 = vmatmul.msk.f32.gmra.mxu1 %vm219_vm1, %v3902_v33  ;;  %786 = vst.msk [vmem:[%s4015_s12 + $0x58] sm:$0xff] %vm219_vm1, %v770_v62 }
  0xfe   : > { %v578_v2 = vpop.f32.mrf.mxu2 }
  0xff   : > { %v728_v3 = vpop.f32.mrf.mxu3  ;;  %v602_v4 = vadd.f32 %v578_v2, %v442_v63 }
 0x100   : > { %v328_v11 = vpop.f32.mrf.mxu0 }
 0x101   : > { %v752_v10 = vadd.f32 %v728_v3, %v602_v4 }
 0x102   : > { %v444_v14 = vpop.f32.mrf.mxu1 }
 0x103   : > { %v771_v15 = vadd.f32 %v4004_v56, %v752_v10  ;;  %3151 = vmatmul.msk.f32.gmra.mxu2 %vm219_vm1, %v3958_v43  ;;  %v445_v38 = vadd.f32 %v444_v14, %v328_v11  ;;  %3100 = vmatmul.msk.f32.gmra.mxu0 %vm219_vm1, %v3165_v48 }
 0x104   : > { %3185 = vmatmul.msk.f32.gmra.mxu3 %vm219_vm1, %v3167_v7 }
 0x105   : > { %3117 = vmatmul.msk.f32.gmra.mxu1 %vm219_vm1, %v3916_v35  ;;  %787 = vst.msk [vmem:[%s4015_s12 + $0x60] sm:$0xff] %vm219_vm1, %v771_v15 }
 0x106   : > { %v581_v39 = vpop.f32.mrf.mxu2 }
 0x107   : > { %v731_v40 = vpop.f32.mrf.mxu3  ;;  %v603_v41 = vadd.f32 %v581_v39, %v445_v38 }
 0x108   : > { %v331_v49 = vpop.f32.mrf.mxu0 }
 0x109   : > { %v753_v46 = vadd.f32 %v731_v40, %v603_v41 }
 0x10a   : > { %v447_v50 = vpop.f32.mrf.mxu1 }
 0x10b   : > { %v772_v51 = vadd.f32 %v4004_v56, %v753_v46  ;;  %3152 = vmatmul.msk.f32.gmra.mxu2 %vm219_vm1, %v3972_v45  ;;  %v448_v48 = vadd.f32 %v447_v50, %v331_v49  ;;  %3101 = vmatmul.msk.f32.gmra.mxu0 %vm219_vm1, %v3166_v58 }
 0x10c   : > { %3186 = vmatmul.msk.f32.gmra.mxu3 %vm219_vm1, %v3168_v44 }
 0x10d   : > { %3118 = vmatmul.msk.f32.gmra.mxu1 %vm219_vm1, %v3930_v37  ;;  %788 = vst.msk [vmem:[%s4015_s12 + $0x68] sm:$0xff] %vm219_vm1, %v772_v51 }
 0x10e   : > { %v584_v52 = vpop.f32.mrf.mxu2 }
 0x10f   : > { %v734_v53 = vpop.f32.mrf.mxu3  ;;  %v604_v54 = vadd.f32 %v584_v52, %v448_v48 }
 0x110   : > { %v334_v59 = vpop.f32.mrf.mxu0 }
 0x111   : > { %v754_v57 = vadd.f32 %v734_v53, %v604_v54 }
 0x112   : > { %v450_v60 = vpop.f32.mrf.mxu1 }
 0x113   : > { %v773_v45 = vadd.f32 %v4004_v56, %v754_v57  ;;  %3153 = vmatmul.msk.f32.gmra.mxu2 %vm219_vm1, %v3983_v47  ;;  %v451_v61 = vadd.f32 %v450_v60, %v334_v59  ;;  %3102 = vmatmul.msk.f32.gmra.mxu0 %vm219_vm1, %v3167_v7 }
 0x114   : > { %3187 = vmatmul.msk.f32.gmra.mxu3 %vm219_vm1, %v3169_v55 }
 0x115   : > { %3119 = vmatmul.msk.f32.gmra.mxu1 %vm219_vm1, %v3958_v43  ;;  %789 = vst.msk [vmem:[%s4015_s12 + $0x70] sm:$0xff] %vm219_vm1, %v773_v45 }
 0x116   : > { %v587_v58 = vpop.f32.mrf.mxu2 }
 0x117   : > { %v737_v62 = vpop.f32.mrf.mxu3  ;;  %v605_v63 = vadd.f32 %v587_v58, %v451_v61 }
 0x118   : > { %v895_v1 = vpop.f32.mrf.mxu0 }
 0x119   : > { %v755_v0 = vadd.f32 %v737_v62, %v605_v63 }
 0x11a   : > { %v1011_v2 = vpop.f32.mrf.mxu1 }
 0x11b   : > { %v774_v3 = vadd.f32 %v4004_v56, %v755_v0  ;;  %3292 = vmatmul.msk.f32.vlgmr.msra.gmra.mxu2 %vm219_vm1, %v3787_v16  ;;  %v1012_v47 = vadd.f32 %v1011_v2, %v895_v1  ;;  %3239 = vmatmul.msk.f32.vlgmr.msra.gmra.mxu0 %vm219_vm1, %v3756_v9 }
 0x11c   : > { %3326 = vmatmul.msk.f32.vlgmr.msra.gmra.mxu3 %vm219_vm1, %v3790_v17 }
 0x11d   : > { %3256 = vmatmul.msk.f32.vlgmr.msra.gmra.mxu1 %vm219_vm1, %v3753_v8  ;;  %790 = vst.msk [vmem:[%s4015_s12 + $0x78] sm:$0xff] %vm219_vm1, %v774_v3 }
 0x11e   : > { %v1145_v4 = vpop.f32.mrf.mxu2 }
 0x11f   : > { %v1295_v5 = vpop.f32.mrf.mxu3  ;;  %v1193_v6 = vadd.f32 %v1145_v4, %v1012_v47 }
 0x120   : > { %v898_v10 = vpop.f32.mrf.mxu0 }
 0x121   : > { %v1343_v7 = vadd.f32 %v1295_v5, %v1193_v6 }
 0x122   : > { %v1014_v11 = vpop.f32.mrf.mxu1 }
 0x123   : > { %v1359_v14 = vadd.f32 %v4004_v56, %v1343_v7  ;;  %3293 = vmatmul.msk.f32.gmra.mxu2 %vm219_vm1, %v3801_v18  ;;  %v1015_v15 = vadd.f32 %v1014_v11, %v898_v10  ;;  %3240 = vmatmul.msk.f32.gmra.mxu0 %vm219_vm1, %v3773_v13 }
 0x124   : > { %3327 = vmatmul.msk.f32.gmra.mxu3 %vm219_vm1, %v3804_v19 }
 0x125   : > { %3257 = vmatmul.msk.f32.gmra.mxu1 %vm219_vm1, %v3770_v12  ;;  %3188 = vst.msk [vmem:[%s4015_s12 + $0x80] sm:$0xff] %vm219_vm1, %v1359_v14 }
 0x126   : > { %v1148_v8 = vpop.f32.mrf.mxu2 }
 0x127   : > { %v1298_v9 = vpop.f32.mrf.mxu3  ;;  %v1194_v38 = vadd.f32 %v1148_v8, %v1015_v15 }
 0x128   : > { %v901_v40 = vpop.f32.mrf.mxu0 }
 0x129   : > { %v1344_v39 = vadd.f32 %v1298_v9, %v1194_v38 }
 0x12a   : > { %v1017_v41 = vpop.f32.mrf.mxu1 }
 0x12b   : > { %v1360_v44 = vadd.f32 %v4004_v56, %v1344_v39  ;;  %3294 = vmatmul.msk.f32.gmra.mxu2 %vm219_vm1, %v3815_v20  ;;  %v1018_v46 = vadd.f32 %v1017_v41, %v901_v40  ;;  %3241 = vmatmul.msk.f32.gmra.mxu0 %vm219_vm1, %v3790_v17 }
 0x12c   : > { %3328 = vmatmul.msk.f32.gmra.mxu3 %vm219_vm1, %v3818_v21 }
 0x12d   : > { %3258 = vmatmul.msk.f32.gmra.mxu1 %vm219_vm1, %v3787_v16  ;;  %3189 = vst.msk [vmem:[%s4015_s12 + $0x88] sm:$0xff] %vm219_vm1, %v1360_v44 }
 0x12e   : > { %v1151_v12 = vpop.f32.mrf.mxu2 }
 0x12f   : > { %v1301_v13 = vpop.f32.mrf.mxu3  ;;  %v1195_v49 = vadd.f32 %v1151_v12, %v1018_v46 }
 0x130   : > { %v904_v51 = vpop.f32.mrf.mxu0 }
 0x131   : > { %v1345_v50 = vadd.f32 %v1301_v13, %v1195_v49  ;;  %v3213_v13 = vld [vmem:[%s3750_s8 + $0x80] sm:$0xff] }
 0x132   : > { %v1020_v48 = vpop.f32.mrf.mxu1 }
 0x133   : > { %v1361_v52 = vadd.f32 %v4004_v56, %v1345_v50  ;;  %3295 = vmatmul.msk.f32.gmra.mxu2 %vm219_vm1, %v3829_v22  ;;  %v1021_v53 = vadd.f32 %v1020_v48, %v904_v51  ;;  %3242 = vmatmul.msk.f32.gmra.mxu0 %vm219_vm1, %v3804_v19 }
 0x134   : > { %3329 = vmatmul.msk.f32.gmra.mxu3 %vm219_vm1, %v3832_v23 }
 0x135   : > { %3259 = vmatmul.msk.f32.gmra.mxu1 %vm219_vm1, %v3801_v18  ;;  %3190 = vst.msk [vmem:[%s4015_s12 + $0x90] sm:$0xff] %vm219_vm1, %v1361_v52 }
 0x136   : > { %v1154_v16 = vpop.f32.mrf.mxu2 }
 0x137   : > { %v1304_v17 = vpop.f32.mrf.mxu3  ;;  %v1196_v54 = vadd.f32 %v1154_v16, %v1021_v53  ;;  %v3214_v53 = vld [vmem:[%s3750_s8 + $0x90] sm:$0xff] }
 0x138   : > { %v907_v57 = vpop.f32.mrf.mxu0 }
 0x139   : > { %v1346_v55 = vadd.f32 %v1304_v17, %v1196_v54 }
 0x13a   : > { %v1023_v59 = vpop.f32.mrf.mxu1 }
 0x13b   : > { %v1362_v60 = vadd.f32 %v4004_v56, %v1346_v55  ;;  %3296 = vmatmul.msk.f32.gmra.mxu2 %vm219_vm1, %v3843_v24  ;;  %v1024_v45 = vadd.f32 %v1023_v59, %v907_v57  ;;  %3243 = vmatmul.msk.f32.gmra.mxu0 %vm219_vm1, %v3818_v21  ;;  %v4300_v59 = vld [vmem:[%s3750_s8 + $0x99] sm:$0xff] }
 0x13c   : > { %3330 = vmatmul.msk.f32.gmra.mxu3 %vm219_vm1, %v3846_v25 }
 0x13d   : > { %3260 = vmatmul.msk.f32.gmra.mxu1 %vm219_vm1, %v3815_v20  ;;  %3191 = vst.msk [vmem:[%s4015_s12 + $0x98] sm:$0xff] %vm219_vm1, %v1362_v60  ;;  %v3215_v60 = vld [vmem:[%s3750_s8 + $0x98] sm:$0xff] }
 0x13e   : > { %v1157_v18 = vpop.f32.mrf.mxu2 }
 0x13f   : > { %v1307_v19 = vpop.f32.mrf.mxu3  ;;  %v1197_v61 = vadd.f32 %v1157_v18, %v1024_v45 }
 0x140   : > { %v910_v62 = vpop.f32.mrf.mxu0 }
 0x141   : > { %v1347_v58 = vadd.f32 %v1307_v19, %v1197_v61 }
 0x142   : > { %v1026_v63 = vpop.f32.mrf.mxu1 }
 0x143   : > { %v1363_v0 = vadd.f32 %v4004_v56, %v1347_v58  ;;  %3297 = vmatmul.msk.f32.gmra.mxu2 %vm219_vm1, %v3857_v26  ;;  %v1027_v1 = vadd.f32 %v1026_v63, %v910_v62  ;;  %3244 = vmatmul.msk.f32.gmra.mxu0 %vm219_vm1, %v3832_v23  ;;  %v3286_v58 = vld [vmem:[%s3750_s8 + $0xc0] sm:$0xff] }
 0x144   : > { %3331 = vmatmul.msk.f32.gmra.mxu3 %vm219_vm1, %v3860_v27  ;;  %v4315_v62 = vld [vmem:[%s3750_s8 + $0xc1] sm:$0xff] }
 0x145   : > { %3261 = vmatmul.msk.f32.gmra.mxu1 %vm219_vm1, %v3829_v22  ;;  %3192 = vst.msk [vmem:[%s4015_s12 + $0xa0] sm:$0xff] %vm219_vm1, %v1363_v0 }
 0x146   : > { %v1160_v20 = vpop.f32.mrf.mxu2 }
 0x147   : > { %v1310_v21 = vpop.f32.mrf.mxu3  ;;  %v1198_v2 = vadd.f32 %v1160_v20, %v1027_v1  ;;  %v3216_v1 = vld [vmem:[%s3750_s8 + $0xa8] sm:$0xff] }
 0x148   : > { %v913_v47 = vpop.f32.mrf.mxu0 }
 0x149   : > { %v1348_v3 = vadd.f32 %v1310_v21, %v1198_v2 }
 0x14a   : > { %v1029_v4 = vpop.f32.mrf.mxu1 }
 0x14b   : > { %v1364_v5 = vadd.f32 %v4004_v56, %v1348_v3  ;;  %3298 = vmatmul.msk.f32.gmra.mxu2 %vm219_vm1, %v3871_v28  ;;  %v1030_v6 = vadd.f32 %v1029_v4, %v913_v47  ;;  %3245 = vmatmul.msk.f32.gmra.mxu0 %vm219_vm1, %v3846_v25  ;;  %v3287_v4 = vld [vmem:[%s3750_s8 + $0xc8] sm:$0xff] }
 0x14c   : > { %3332 = vmatmul.msk.f32.gmra.mxu3 %vm219_vm1, %v3874_v29 }
 0x14d   : > { %3262 = vmatmul.msk.f32.gmra.mxu1 %vm219_vm1, %v3843_v24  ;;  %3193 = vst.msk [vmem:[%s4015_s12 + $0xa8] sm:$0xff] %vm219_vm1, %v1364_v5  ;;  %v4332_v5 = vld [vmem:[%s3750_s8 + $0xc9] sm:$0xff] }
 0x14e   : > { %v1163_v22 = vpop.f32.mrf.mxu2 }
 0x14f   : > { %v1313_v23 = vpop.f32.mrf.mxu3  ;;  %v1199_v7 = vadd.f32 %v1163_v22, %v1030_v6 }
 0x150   : > { %v916_v11 = vpop.f32.mrf.mxu0 }
 0x151   : > { %v1349_v10 = vadd.f32 %v1313_v23, %v1199_v7  ;;  %v4335_v7 = vld [vmem:[%s3750_s8 + $0xb1] sm:$0xff] }
 0x152   : > { %v1032_v14 = vpop.f32.mrf.mxu1 }
 0x153   : > { %v1365_v15 = vadd.f32 %v4004_v56, %v1349_v10  ;;  %3299 = vmatmul.msk.f32.gmra.mxu2 %vm219_vm1, %v3885_v30  ;;  %v1033_v8 = vadd.f32 %v1032_v14, %v916_v11  ;;  %3246 = vmatmul.msk.f32.gmra.mxu0 %vm219_vm1, %v3860_v27  ;;  %v3217_v10 = vld [vmem:[%s3750_s8 + $0xb0] sm:$0xff] }
 0x154   : > { %3333 = vmatmul.msk.f32.gmra.mxu3 %vm219_vm1, %v3888_v31 }
 0x155   : > { %3263 = vmatmul.msk.f32.gmra.mxu1 %vm219_vm1, %v3857_v26  ;;  %3194 = vst.msk [vmem:[%s4015_s12 + $0xb0] sm:$0xff] %vm219_vm1, %v1365_v15 }
 0x156   : > { %v1166_v24 = vpop.f32.mrf.mxu2 }
 0x157   : > { %v1316_v25 = vpop.f32.mrf.mxu3  ;;  %v1200_v9 = vadd.f32 %v1166_v24, %v1033_v8 }
 0x158   : > { %v919_v39 = vpop.f32.mrf.mxu0 }
 0x159   : > { %v1350_v38 = vadd.f32 %v1316_v25, %v1200_v9  ;;  %v3288_v25 = vld [vmem:[%s3750_s8 + $0xd8] sm:$0xff] }
 0x15a   : > { %v1035_v30 = vpop.f32.mrf.mxu1  ;;  %v4349_v9 = vld [vmem:[%s3750_s8 + $0xd9] sm:$0xff] }
 0x15b   : > { %v1366_v40 = vadd.f32 %v4004_v56, %v1350_v38  ;;  %3300 = vmatmul.msk.f32.gmra.mxu2 %vm219_vm1, %v3899_v32  ;;  %v1036_v41 = vadd.f32 %v1035_v30, %v919_v39  ;;  %3247 = vmatmul.msk.f32.gmra.mxu0 %vm219_vm1, %v3874_v29 }
 0x15c   : > { %3334 = vmatmul.msk.f32.gmra.mxu3 %vm219_vm1, %v3902_v33 }
 0x15d   : > { %3264 = vmatmul.msk.f32.gmra.mxu1 %vm219_vm1, %v3871_v28  ;;  %3195 = vst.msk [vmem:[%s4015_s12 + $0xb8] sm:$0xff] %vm219_vm1, %v1366_v40 }
 0x15e   : > { %v1169_v26 = vpop.f32.mrf.mxu2 }
 0x15f   : > { %v1319_v27 = vpop.f32.mrf.mxu3  ;;  %v1201_v44 = vadd.f32 %v1169_v26, %v1036_v41 }
 0x160   : > { %v922_v12 = vpop.f32.mrf.mxu0 }
 0x161   : > { %v1351_v46 = vadd.f32 %v1319_v27, %v1201_v44 }
 0x162   : > { %v1038_v32 = vpop.f32.mrf.mxu1 }
 0x163   : > { %v1367_v33 = vadd.f32 %v4004_v56, %v1351_v46  ;;  %3301 = vmatmul.msk.f32.gmra.mxu2 %vm219_vm1, %v3913_v34  ;;  %v1039_v29 = vadd.f32 %v1038_v32, %v922_v12  ;;  %3248 = vmatmul.msk.f32.gmra.mxu0 %vm219_vm1, %v3888_v31  ;;  %v4286_v34 = vld [vmem:[%s3750_s8 + $0x91] sm:$0xff]  ;;  %v3289_v46 = vld [vmem:[%s3750_s8 + $0xe0] sm:$0xff] }
 0x164   : > { %3335 = vmatmul.msk.f32.gmra.mxu3 %vm219_vm1, %v3916_v35  ;;  %v4362_v12 = vld [vmem:[%s3750_s8 + $0xe1] sm:$0xff] }
 0x165   : > { %3265 = vmatmul.msk.f32.gmra.mxu1 %vm219_vm1, %v3213_v13  ;;  %3196 = vst.msk [vmem:[%s4015_s12 + $0xc0] sm:$0xff] %vm219_vm1, %v1367_v33 }
 0x166   : > { %v1172_v28 = vpop.f32.mrf.mxu2 }
 0x167   : > { %v1322_v49 = vpop.f32.mrf.mxu3  ;;  %v1202_v50 = vadd.f32 %v1172_v28, %v1039_v29 }
 0x168   : > { %v925_v48 = vpop.f32.mrf.mxu0 }
 0x169   : > { %v1352_v51 = vadd.f32 %v1322_v49, %v1202_v50 }
 0x16a   : > { %v1041_v52 = vpop.f32.mrf.mxu1 }
 0x16b   : > { %v1368_v35 = vadd.f32 %v4004_v56, %v1352_v51  ;;  %3302 = vmatmul.msk.f32.gmra.mxu2 %vm219_vm1, %v3927_v36  ;;  %v1042_v31 = vadd.f32 %v1041_v52, %v925_v48  ;;  %3249 = vmatmul.msk.f32.gmra.mxu0 %vm219_vm1, %v4286_v34  ;;  %v3426_v48 = vld [vmem:[%s3750_s8 + $0x31] sm:$0xff] }
 0x16c   : > { %3336 = vmatmul.msk.f32.gmra.mxu3 %vm219_vm1, %v3930_v37  ;;  %v3460_v52 = vld [vmem:[%s3750_s8 + $0x32] sm:$0xff] }
 0x16d   : > { %3266 = vmatmul.msk.f32.gmra.mxu1 %vm219_vm1, %v3214_v53  ;;  %3197 = vst.msk [vmem:[%s4015_s12 + $0xc8] sm:$0xff] %vm219_vm1, %v1368_v35 }
 0x16e   : > { %v1175_v16 = vpop.f32.mrf.mxu2 }
 0x16f   : > { %v1325_v17 = vpop.f32.mrf.mxu3  ;;  %v1203_v54 = vadd.f32 %v1175_v16, %v1042_v31  ;;  %v3375_v16 = vld [vmem:[%s3750_s8 + $0x1a] sm:$0xff] }
 0x170   : > { %v928_v57 = vpop.f32.mrf.mxu0 }
 0x171   : > { %v1353_v55 = vadd.f32 %v1325_v17, %v1203_v54  ;;  %v3358_v17 = vld [vmem:[%s3750_s8 + $0x19] sm:$0xff] }
 0x172   : > { %v1044_v36 = vpop.f32.mrf.mxu1 }
 0x173   : > { %v1369_v37 = vadd.f32 %v4004_v56, %v1353_v55  ;;  %3303 = vmatmul.msk.f32.gmra.mxu2 %vm219_vm1, %v3955_v42  ;;  %v1045_v45 = vadd.f32 %v1044_v36, %v928_v57  ;;  %3250 = vmatmul.msk.f32.gmra.mxu0 %vm219_vm1, %v4300_v59 }
 0x174   : > { %3337 = vmatmul.msk.f32.gmra.mxu3 %vm219_vm1, %v3958_v43  ;;  %v4318_v43 = vld [vmem:[%s3750_s8 + $0xa9] sm:$0xff] }
 0x175   : > { %3267 = vmatmul.msk.f32.gmra.mxu1 %vm219_vm1, %v3215_v60  ;;  %3198 = vst.msk [vmem:[%s4015_s12 + $0xd0] sm:$0xff] %vm219_vm1, %v1369_v37  ;;  %v3427_v37 = vld [vmem:[%s3750_s8 + $0x39] sm:$0xff] }
 0x176   : > { %v1178_v18 = vpop.f32.mrf.mxu2 }
 0x177   : > { %v1328_v19 = vpop.f32.mrf.mxu3  ;;  %v1204_v61 = vadd.f32 %v1178_v18, %v1045_v45  ;;  %v3461_v45 = vld [vmem:[%s3750_s8 + $0x3a] sm:$0xff] }
 0x178   : > { %v931_v63 = vpop.f32.mrf.mxu0 }
 0x179   : > { %v1354_v42 = vadd.f32 %v1328_v19, %v1204_v61 }
 0x17a   : > { %v1047_v0 = vpop.f32.mrf.mxu1 }
 0x17b   : > { %v1370_v20 = vadd.f32 %v4004_v56, %v1354_v42  ;;  %3304 = vmatmul.msk.f32.gmra.mxu2 %vm219_vm1, %v3286_v58  ;;  %v1048_v21 = vadd.f32 %v1047_v0, %v931_v63  ;;  %3251 = vmatmul.msk.f32.gmra.mxu0 %vm219_vm1, %v4318_v43  ;;  %v3359_v42 = vld [vmem:[%s3750_s8 + $0x21] sm:$0xff] }
 0x17c   : > { %3338 = vmatmul.msk.f32.gmra.mxu3 %vm219_vm1, %v4315_v62 }
 0x17d   : > { %3268 = vmatmul.msk.f32.gmra.mxu1 %vm219_vm1, %v3216_v1  ;;  %3199 = vst.msk [vmem:[%s4015_s12 + $0xd8] sm:$0xff] %vm219_vm1, %v1370_v20 }
 0x17e   : > { %v1181_v2 = vpop.f32.mrf.mxu2 }
 0x17f   : > { %v1331_v3 = vpop.f32.mrf.mxu3  ;;  %v1205_v47 = vadd.f32 %v1181_v2, %v1048_v21  ;;  %v3428_v2 = vld [vmem:[%s3750_s8 + $0x49] sm:$0xff] }
 0x180   : > { %v934_v22 = vpop.f32.mrf.mxu0 }
 0x181   : > { %v1355_v6 = vadd.f32 %v1331_v3, %v1205_v47  ;;  %v3462_v3 = vld [vmem:[%s3750_s8 + $0x4a] sm:$0xff] }
 0x182   : > { %v1050_v23 = vpop.f32.mrf.mxu1 }
 0x183   : > { %v1371_v11 = vadd.f32 %v4004_v56, %v1355_v6  ;;  %3305 = vmatmul.msk.f32.gmra.mxu2 %vm219_vm1, %v3287_v4  ;;  %v1051_v14 = vadd.f32 %v1050_v23, %v934_v22  ;;  %3252 = vmatmul.msk.f32.gmra.mxu0 %vm219_vm1, %v4335_v7 }
 0x184   : > { %3339 = vmatmul.msk.f32.gmra.mxu3 %vm219_vm1, %v4332_v5 }
 0x185   : > { %3269 = vmatmul.msk.f32.gmra.mxu1 %vm219_vm1, %v3217_v10  ;;  %3200 = vst.msk [vmem:[%s4015_s12 + $0xe0] sm:$0xff] %vm219_vm1, %v1371_v11 }
 0x186   : > { %v1184_v15 = vpop.f32.mrf.mxu2 }
 0x187   : > { %v1334_v8 = vpop.f32.mrf.mxu3  ;;  %v1206_v24 = vadd.f32 %v1184_v15, %v1051_v14  ;;  %v3429_v15 = vld [vmem:[%s3750_s8 + $0x51] sm:$0xff] }
 0x188   : > { %v937_v39 = vpop.f32.mrf.mxu0 }
 0x189   : > { %v1356_v38 = vadd.f32 %v1334_v8, %v1206_v24  ;;  %v3463_v8 = vld [vmem:[%s3750_s8 + $0x52] sm:$0xff] }
 0x18a   : > { %v1053_v30 = vpop.f32.mrf.mxu1 }
 0x18b   : > { %v1372_v40 = vadd.f32 %v4004_v56, %v1356_v38  ;;  %3306 = vmatmul.msk.f32.gmra.mxu2 %vm219_vm1, %v3288_v25  ;;  %v1054_v41 = vadd.f32 %v1053_v30, %v937_v39  ;;  %3253 = vmatmul.msk.f32.gmra.mxu0 %vm219_vm1, %v4315_v62 }
 0x18c   : > { %3340 = vmatmul.msk.f32.gmra.mxu3 %vm219_vm1, %v4349_v9 }
 0x18d   : > { %3270 = vmatmul.msk.f32.gmra.mxu1 %vm219_vm1, %v3286_v58  ;;  %3201 = vst.msk [vmem:[%s4015_s12 + $0xe8] sm:$0xff] %vm219_vm1, %v1372_v40  ;;  %v3376_v58 = vld [vmem:[%s3750_s8 + $0x22] sm:$0xff] }
 0x18e   : > { %v1187_v26 = vpop.f32.mrf.mxu2 }
 0x18f   : > { %v1337_v27 = vpop.f32.mrf.mxu3  ;;  %v1207_v44 = vadd.f32 %v1187_v26, %v1054_v41 }
 0x190   : > { %v940_v13 = vpop.f32.mrf.mxu0 }
 0x191   : > { %v1357_v32 = vadd.f32 %v1337_v27, %v1207_v44  ;;  %v3430_v27 = vld [vmem:[%s3750_s8 + $0x61] sm:$0xff] }
 0x192   : > { %v1056_v33 = vpop.f32.mrf.mxu1  ;;  %v3464_v44 = vld [vmem:[%s3750_s8 + $0x62] sm:$0xff] }
 0x193   : > { %v1373_v29 = vadd.f32 %v4004_v56, %v1357_v32  ;;  %3307 = vmatmul.msk.f32.gmra.mxu2 %vm219_vm1, %v3289_v46  ;;  %v1057_v28 = vadd.f32 %v1056_v33, %v940_v13  ;;  %3254 = vmatmul.msk.f32.gmra.mxu0 %vm219_vm1, %v4332_v5  ;;  %v4418_v13 = vld [vmem:[%s4743_s2] ss:$0 sm:$0xff] }
 0x194   : > { %3341 = vmatmul.msk.f32.gmra.mxu3 %vm219_vm1, %v4362_v12 }
 0x195   : > { %3271 = vmatmul.msk.f32.gmra.mxu1 %vm219_vm1, %v3287_v4  ;;  %3202 = vst.msk [vmem:[%s4015_s12 + $0xf0] sm:$0xff] %vm219_vm1, %v1373_v29 }
 0x196   : > { %v1190_v49 = vpop.f32.mrf.mxu2 }
 0x197   : > { %v1340_v50 = vpop.f32.mrf.mxu3  ;;  %v1208_v51 = vadd.f32 %v1190_v49, %v1057_v28 }
 0x198   : > { %v1496_v35 = vpop.f32.mrf.mxu0 }
 0x199   : > { %v1358_v53 = vadd.f32 %v1340_v50, %v1208_v51  ;;  %v3431_v51 = vld [vmem:[%s3750_s8 + $0x69] sm:$0xff] }
 0x19a   : > { %v1612_v31 = vpop.f32.mrf.mxu1 }
 0x19b   : > { %v1374_v54 = vadd.f32 %v4004_v56, %v1358_v53  ;;  %3444 = vmatmul.msk.f32.vlgmr.msrb.gmra.mxu2 %vm219_vm1, %v3426_v48  ;;  %v1613_v55 = vadd.f32 %v1612_v31, %v1496_v35  ;;  %3393 = vmatmul.msk.f32.vlgmr.msrb.gmra.mxu0 %vm219_vm1, %v3375_v16 }
 0x19c   : > { %3478 = vmatmul.msk.f32.vlgmr.msrb.gmra.mxu3 %vm219_vm1, %v3460_v52 }
 0x19d   : > { %3410 = vmatmul.msk.f32.vlgmr.msrb.gmra.mxu1 %vm219_vm1, %v3358_v17  ;;  %3203 = vst.msk [vmem:[%s4015_s12 + $0xf8] sm:$0xff] %vm219_vm1, %v1374_v54 }
 0x19e   : > { %v1749_v57 = vpop.f32.mrf.mxu2 }
 0x19f   : > { %v1899_v36 = vpop.f32.mrf.mxu3  ;;  %v1797_v60 = vadd.f32 %v1749_v57, %v1613_v55  ;;  %v3432_v57 = vld [vmem:[%s3750_s8 + $0x79] sm:$0xff] }
 0x1a0   : > { %v1499_v19 = vpop.f32.mrf.mxu0 }
 0x1a1   : > { %v1947_v18 = vadd.f32 %v1899_v36, %v1797_v60  ;;  %v3466_v36 = vld [vmem:[%s3750_s8 + $0x7a] sm:$0xff] }
 0x1a2   : > { %v1615_v61 = vpop.f32.mrf.mxu1 }
 0x1a3   : > { %v1963_v63 = vadd.f32 %v4004_v56, %v1947_v18  ;;  %3445 = vmatmul.msk.f32.gmra.mxu2 %vm219_vm1, %v3427_v37  ;;  %v1616_v0 = vadd.f32 %v1615_v61, %v1499_v19  ;;  %3394 = vmatmul.msk.f32.gmra.mxu0 %vm219_vm1, %v3376_v58 }
 0x1a4   : > { %3479 = vmatmul.msk.f32.gmra.mxu3 %vm219_vm1, %v3461_v45 }
 0x1a5   : > { %3411 = vmatmul.msk.f32.gmra.mxu1 %vm219_vm1, %v3359_v42  ;;  %3342 = vst.msk [vmem:[%s4015_s12 + $0x100] sm:$0xff] %vm219_vm1, %v1963_v63  ;;  %v3433_v63 = vld [vmem:[%s3750_s8 + $0x81] sm:$0xff] }
 0x1a6   : > { %v1752_v1 = vpop.f32.mrf.mxu2 }
 0x1a7   : > { %v1902_v20 = vpop.f32.mrf.mxu3  ;;  %v1798_v21 = vadd.f32 %v1752_v1, %v1616_v0  ;;  %v3467_v0 = vld [vmem:[%s3750_s8 + $0x82] sm:$0xff] }
 0x1a8   : > { %v1502_v4 = vpop.f32.mrf.mxu0 }
 0x1a9   : > { %v1948_v47 = vadd.f32 %v1902_v20, %v1798_v21 }
 0x1aa   : > { %v1618_v6 = vpop.f32.mrf.mxu1 }
 0x1ab   : > { %v1964_v22 = vadd.f32 %v4004_v56, %v1948_v47  ;;  %3446 = vmatmul.msk.f32.gmra.mxu2 %vm219_vm1, %v3428_v2  ;;  %v1619_v23 = vadd.f32 %v1618_v6, %v1502_v4  ;;  %3395 = vmatmul.msk.f32.gmra.mxu0 %vm219_vm1, %v3460_v52 }
 0x1ac   : > { %3480 = vmatmul.msk.f32.gmra.mxu3 %vm219_vm1, %v3462_v3 }
 0x1ad   : > { %3412 = vmatmul.msk.f32.gmra.mxu1 %vm219_vm1, %v3426_v48  ;;  %3343 = vst.msk [vmem:[%s4015_s12 + $0x108] sm:$0xff] %vm219_vm1, %v1964_v22  ;;  %v3465_v48 = vld [vmem:[%s3750_s8 + $0x6a] sm:$0xff]  ;;  %v3468_v22 = vld [vmem:[%s3750_s8 + $0x92] sm:$0xff] }
 0x1ae   : > { %v1755_v10 = vpop.f32.mrf.mxu2 }
 0x1af   : > { %v1905_v11 = vpop.f32.mrf.mxu3  ;;  %v1799_v14 = vadd.f32 %v1755_v10, %v1619_v23 }
 0x1b0   : > { %v1505_v25 = vpop.f32.mrf.mxu0 }
 0x1b1   : > { %v1949_v24 = vadd.f32 %v1905_v11, %v1799_v14 }
 0x1b2   : > { %v1621_v38 = vpop.f32.mrf.mxu1 }
 0x1b3   : > { %v1965_v39 = vadd.f32 %v4004_v56, %v1949_v24  ;;  %3447 = vmatmul.msk.f32.gmra.mxu2 %vm219_vm1, %v3429_v15  ;;  %v1622_v30 = vadd.f32 %v1621_v38, %v1505_v25  ;;  %3396 = vmatmul.msk.f32.gmra.mxu0 %vm219_vm1, %v3461_v45  ;;  %v3469_v38 = vld [vmem:[%s3750_s8 + $0x9a] sm:$0xff] }
 0x1b4   : > { %3481 = vmatmul.msk.f32.gmra.mxu3 %vm219_vm1, %v3463_v8 }
 0x1b5   : > { %3413 = vmatmul.msk.f32.gmra.mxu1 %vm219_vm1, %v3427_v37  ;;  %3344 = vst.msk [vmem:[%s4015_s12 + $0x110] sm:$0xff] %vm219_vm1, %v1965_v39 }
 0x1b6   : > { %v1758_v40 = vpop.f32.mrf.mxu2 }
 0x1b7   : > { %v1908_v41 = vpop.f32.mrf.mxu3  ;;  %v1800_v26 = vadd.f32 %v1758_v40, %v1622_v30 }
 0x1b8   : > { %v1508_v46 = vpop.f32.mrf.mxu0 }
 0x1b9   : > { %v1950_v56 = vadd.f32 %v1908_v41, %v1800_v26 }
 0x1ba   : > { %v1624_v32 = vpop.f32.mrf.mxu1 }
 0x1bb   : > { %v1966_v33 = vadd.f32 %v4418_v13, %v1950_v56  ;;  %3448 = vmatmul.msk.f32.gmra.mxu2 %vm219_vm1, %v3430_v27  ;;  %v1625_v29 = vadd.f32 %v1624_v32, %v1508_v46  ;;  %3397 = vmatmul.msk.f32.gmra.mxu0 %vm219_vm1, %v3462_v3  ;;  %v3470_v46 = vld [vmem:[%s3750_s8 + $0xaa] sm:$0xff] }
 0x1bc   : > { %3482 = vmatmul.msk.f32.gmra.mxu3 %vm219_vm1, %v3464_v44 }
 0x1bd   : > { %3414 = vmatmul.msk.f32.gmra.mxu1 %vm219_vm1, %v3428_v2  ;;  %3345 = vst.msk [vmem:[%s4015_s12 + $0x118] sm:$0xff] %vm219_vm1, %v1966_v33 }
 0x1be   : > { %v1761_v28 = vpop.f32.mrf.mxu2 }
 0x1bf   : > { %v1911_v49 = vpop.f32.mrf.mxu3  ;;  %v1801_v50 = vadd.f32 %v1761_v28, %v1625_v29 }
 0x1c0   : > { %v1511_v53 = vpop.f32.mrf.mxu0 }
 0x1c1   : > { %v1951_v52 = vadd.f32 %v1911_v49, %v1801_v50 }
 0x1c2   : > { %v1627_v35 = vpop.f32.mrf.mxu1 }
 0x1c3   : > { %v1967_v31 = vadd.f32 %v4418_v13, %v1951_v52  ;;  %3449 = vmatmul.msk.f32.gmra.mxu2 %vm219_vm1, %v3431_v51  ;;  %v1628_v16 = vadd.f32 %v1627_v35, %v1511_v53  ;;  %3398 = vmatmul.msk.f32.gmra.mxu0 %vm219_vm1, %v3463_v8  ;;  %v3471_v52 = vld [vmem:[%s3750_s8 + $0xb2] sm:$0xff] }
 0x1c4   : > { %3483 = vmatmul.msk.f32.gmra.mxu3 %vm219_vm1, %v3465_v48 }
 0x1c5   : > { %3415 = vmatmul.msk.f32.gmra.mxu1 %vm219_vm1, %v3429_v15  ;;  %3346 = vst.msk [vmem:[%s4015_s12 + $0x120] sm:$0xff] %vm219_vm1, %v1967_v31 }
 0x1c6   : > { %v1764_v17 = vpop.f32.mrf.mxu2 }
 0x1c7   : > { %v1914_v54 = vpop.f32.mrf.mxu3  ;;  %v1802_v55 = vadd.f32 %v1764_v17, %v1628_v16 }
 0x1c8   : > { %v1514_v37 = vpop.f32.mrf.mxu0 }
 0x1c9   : > { %v1952_v60 = vadd.f32 %v1914_v54, %v1802_v55 }
 0x1ca   : > { %v1630_v45 = vpop.f32.mrf.mxu1 }
 0x1cb   : > { %v1968_v18 = vadd.f32 %v4418_v13, %v1952_v60  ;;  %3450 = vmatmul.msk.f32.gmra.mxu2 %vm219_vm1, %v3432_v57  ;;  %v1631_v19 = vadd.f32 %v1630_v45, %v1514_v37  ;;  %3399 = vmatmul.msk.f32.gmra.mxu0 %vm219_vm1, %v3464_v44 }
 0x1cc   : > { %3484 = vmatmul.msk.f32.gmra.mxu3 %vm219_vm1, %v3466_v36 }
 0x1cd   : > { %3416 = vmatmul.msk.f32.gmra.mxu1 %vm219_vm1, %v3430_v27  ;;  %3347 = vst.msk [vmem:[%s4015_s12 + $0x128] sm:$0xff] %vm219_vm1, %v1968_v18 }
 0x1ce   : > { %v1767_v61 = vpop.f32.mrf.mxu2 }
 0x1cf   : > { %v1917_v58 = vpop.f32.mrf.mxu3  ;;  %v1803_v42 = vadd.f32 %v1767_v61, %v1631_v19 }
 0x1d0   : > { %v1517_v20 = vpop.f32.mrf.mxu0 }
 0x1d1   : > { %v1953_v1 = vadd.f32 %v1917_v58, %v1803_v42  ;;  %v3473_v58 = vld [vmem:[%s3750_s8 + $0xca] sm:$0xff] }
 0x1d2   : > { %v1633_v21 = vpop.f32.mrf.mxu1 }
 0x1d3   : > { %v1969_v2 = vadd.f32 %v4418_v13, %v1953_v1  ;;  %3451 = vmatmul.msk.f32.gmra.mxu2 %vm219_vm1, %v3433_v63  ;;  %v1634_v3 = vadd.f32 %v1633_v21, %v1517_v20  ;;  %3400 = vmatmul.msk.f32.gmra.mxu0 %vm219_vm1, %v3465_v48 }
 0x1d4   : > { %3485 = vmatmul.msk.f32.gmra.mxu3 %vm219_vm1, %v3467_v0 }
 0x1d5   : > { %3417 = vmatmul.msk.f32.gmra.mxu1 %vm219_vm1, %v3431_v51  ;;  %3348 = vst.msk [vmem:[%s4015_s12 + $0x130] sm:$0xff] %vm219_vm1, %v1969_v2 }
 0x1d6   : > { %v1770_v47 = vpop.f32.mrf.mxu2 }
 0x1d7   : > { %v1920_v4 = vpop.f32.mrf.mxu3  ;;  %v1804_v6 = vadd.f32 %v1770_v47, %v1634_v3  ;;  %v3474_v3 = vld [vmem:[%s3750_s8 + $0xda] sm:$0xff] }
 0x1d8   : > { %v1520_v10 = vpop.f32.mrf.mxu0 }
 0x1d9   : > { %v1954_v23 = vadd.f32 %v1920_v4, %v1804_v6 }
 0x1da   : > { %v1636_v11 = vpop.f32.mrf.mxu1 }
 0x1db   : > { %v1970_v14 = vadd.f32 %v4418_v13, %v1954_v23  ;;  %3452 = vmatmul.msk.f32.gmra.mxu2 %vm219_vm1, %v4286_v34  ;;  %v1637_v15 = vadd.f32 %v1636_v11, %v1520_v10  ;;  %3401 = vmatmul.msk.f32.gmra.mxu0 %vm219_vm1, %v3466_v36 }
 0x1dc   : > { %3486 = vmatmul.msk.f32.gmra.mxu3 %vm219_vm1, %v3468_v22 }
 0x1dd   : > { %3418 = vmatmul.msk.f32.gmra.mxu1 %vm219_vm1, %v3432_v57  ;;  %3349 = vst.msk [vmem:[%s4015_s12 + $0x138] sm:$0xff] %vm219_vm1, %v1970_v14  ;;  %v3472_v57 = vld [vmem:[%s3750_s8 + $0xc2] sm:$0xff] }
 0x1de   : > { %v1773_v8 = vpop.f32.mrf.mxu2  ;;  %v3475_v14 = vld [vmem:[%s3750_s8 + $0xe2] sm:$0xff]  ;;  %s3517_s8 = sshll.u32 (%p3699_p5), %s3615_s14, 4 }
 0x1df   : > { %v1923_v24 = vpop.f32.mrf.mxu3  ;;  %v1805_v25 = vadd.f32 %v1773_v8, %v1637_v15  ;;  %s2607_s26 = sadd.s32 (%p3699_p5), %s3517_s8, %s3513_s25 }
 0x1e0   : > { %v1523_v30 = vpop.f32.mrf.mxu0  ;;  %s3514_s28 = sshll.u32 (%p3699_p5), %s2607_s26, 3 }
 0x1e1   : > { %v1955_v39 = vadd.f32 %v1923_v24, %v1805_v25  ;;  %s4592_s4 = scalar_lea.vmem (%p3699_p5), %s4744_s3, %s3514_s28 }
 0x1e2   : > { %v1639_v40 = vpop.f32.mrf.mxu1 }
 0x1e3   : > { %v1971_v41 = vadd.f32 %v4418_v13, %v1955_v39  ;;  %3453 = vmatmul.msk.f32.gmra.mxu2 %vm219_vm1, %v4300_v59  ;;  %v1640_v26 = vadd.f32 %v1639_v40, %v1523_v30  ;;  %3402 = vmatmul.msk.f32.gmra.mxu0 %vm219_vm1, %v3467_v0 }
 0x1e4   : > { %3487 = vmatmul.msk.f32.gmra.mxu3 %vm219_vm1, %v3469_v38 }
 0x1e5   : > { %3419 = vmatmul.msk.f32.gmra.mxu1 %vm219_vm1, %v3433_v63  ;;  %3350 = vst.msk [vmem:[%s4015_s12 + $0x140] sm:$0xff] %vm219_vm1, %v1971_v41 }
 0x1e6   : > { %v1776_v27 = vpop.f32.mrf.mxu2 }
 0x1e7   : > { %v1926_v44 = vpop.f32.mrf.mxu3  ;;  %v1806_v56 = vadd.f32 %v1776_v27, %v1640_v26 }
 0x1e8   : > { %v1526_v33 = vpop.f32.mrf.mxu0 }
 0x1e9   : > { %v1956_v32 = vadd.f32 %v1926_v44, %v1806_v56 }
 0x1ea   : > { %v1642_v29 = vpop.f32.mrf.mxu1 }
 0x1eb   : > { %v1972_v28 = vadd.f32 %v4418_v13, %v1956_v32  ;;  %3454 = vmatmul.msk.f32.gmra.mxu2 %vm219_vm1, %v4318_v43  ;;  %v1643_v49 = vadd.f32 %v1642_v29, %v1526_v33  ;;  %3403 = vmatmul.msk.f32.gmra.mxu0 %vm219_vm1, %v3468_v22 }
 0x1ec   : > { %3488 = vmatmul.msk.f32.gmra.mxu3 %vm219_vm1, %v3470_v46 }
 0x1ed   : > { %3420 = vmatmul.msk.f32.gmra.mxu1 %vm219_vm1, %v4286_v34  ;;  %3351 = vst.msk [vmem:[%s4015_s12 + $0x148] sm:$0xff] %vm219_vm1, %v1972_v28 }
 0x1ee   : > { %v1779_v50 = vpop.f32.mrf.mxu2 }
 0x1ef   : > { %v1929_v51 = vpop.f32.mrf.mxu3  ;;  %v1807_v48 = vadd.f32 %v1779_v50, %v1643_v49 }
 0x1f0   : > { %v1529_v35 = vpop.f32.mrf.mxu0 }
 0x1f1   : > { %v1957_v53 = vadd.f32 %v1929_v51, %v1807_v48 }
 0x1f2   : > { %v1645_v31 = vpop.f32.mrf.mxu1 }
 0x1f3   : > { %v1973_v16 = vadd.f32 %v4418_v13, %v1957_v53  ;;  %3455 = vmatmul.msk.f32.gmra.mxu2 %vm219_vm1, %v4335_v7  ;;  %v1646_v17 = vadd.f32 %v1645_v31, %v1529_v35  ;;  %3404 = vmatmul.msk.f32.gmra.mxu0 %vm219_vm1, %v3469_v38 }
 0x1f4   : > { %3489 = vmatmul.msk.f32.gmra.mxu3 %vm219_vm1, %v3471_v52 }
 0x1f5   : > { %3421 = vmatmul.msk.f32.gmra.mxu1 %vm219_vm1, %v4300_v59  ;;  %3352 = vst.msk [vmem:[%s4015_s12 + $0x150] sm:$0xff] %vm219_vm1, %v1973_v16 }
 0x1f6   : > { %v1782_v34 = vpop.f32.mrf.mxu2 }
 0x1f7   : > { %v1932_v54 = vpop.f32.mrf.mxu3  ;;  %v1808_v55 = vadd.f32 %v1782_v34, %v1646_v17 }
 0x1f8   : > { %v1532_v60 = vpop.f32.mrf.mxu0 }
 0x1f9   : > { %v1958_v36 = vadd.f32 %v1932_v54, %v1808_v55 }
 0x1fa   : > { %v1648_v37 = vpop.f32.mrf.mxu1 }
 0x1fb   : > { %v1974_v45 = vadd.f32 %v4418_v13, %v1958_v36  ;;  %3456 = vmatmul.msk.f32.gmra.mxu2 %vm219_vm1, %v4315_v62  ;;  %v1649_v18 = vadd.f32 %v1648_v37, %v1532_v60  ;;  %3405 = vmatmul.msk.f32.gmra.mxu0 %vm219_vm1, %v3470_v46 }
 0x1fc   : > { %3490 = vmatmul.msk.f32.gmra.mxu3 %vm219_vm1, %v3472_v57 }
 0x1fd   : > { %3422 = vmatmul.msk.f32.gmra.mxu1 %vm219_vm1, %v4318_v43  ;;  %3353 = vst.msk [vmem:[%s4015_s12 + $0x158] sm:$0xff] %vm219_vm1, %v1974_v45 }
 0x1fe   : > { %v1785_v59 = vpop.f32.mrf.mxu2 }
 0x1ff   : > { %v1935_v19 = vpop.f32.mrf.mxu3  ;;  %v1809_v61 = vadd.f32 %v1785_v59, %v1649_v18 }
 0x200   : > { %v1535_v63 = vpop.f32.mrf.mxu0 }
 0x201   : > { %v1959_v42 = vadd.f32 %v1935_v19, %v1809_v61 }
 0x202   : > { %v1651_v0 = vpop.f32.mrf.mxu1 }
 0x203   : > { %v1975_v1 = vadd.f32 %v4418_v13, %v1959_v42  ;;  %3457 = vmatmul.msk.f32.gmra.mxu2 %vm219_vm1, %v4332_v5  ;;  %v1652_v20 = vadd.f32 %v1651_v0, %v1535_v63  ;;  %3406 = vmatmul.msk.f32.gmra.mxu0 %vm219_vm1, %v3471_v52 }
 0x204   : > { %3491 = vmatmul.msk.f32.gmra.mxu3 %vm219_vm1, %v3473_v58 }
 0x205   : > { %3423 = vmatmul.msk.f32.gmra.mxu1 %vm219_vm1, %v4335_v7  ;;  %3354 = vst.msk [vmem:[%s4015_s12 + $0x160] sm:$0xff] %vm219_vm1, %v1975_v1 }
 0x206   : > { %v1788_v43 = vpop.f32.mrf.mxu2 }
 0x207   : > { %v1938_v21 = vpop.f32.mrf.mxu3  ;;  %v1810_v2 = vadd.f32 %v1788_v43, %v1652_v20 }
 0x208   : > { %v1538_v4 = vpop.f32.mrf.mxu0 }
 0x209   : > { %v1960_v47 = vadd.f32 %v1938_v21, %v1810_v2 }
 0x20a   : > { %v1654_v6 = vpop.f32.mrf.mxu1 }
 0x20b   : > { %v1976_v22 = vadd.f32 %v4418_v13, %v1960_v47  ;;  %3458 = vmatmul.msk.f32.gmra.mxu2 %vm219_vm1, %v4349_v9  ;;  %v1655_v23 = vadd.f32 %v1654_v6, %v1538_v4  ;;  %3407 = vmatmul.msk.f32.gmra.mxu0 %vm219_vm1, %v3472_v57 }
 0x20c   : > { %3492 = vmatmul.msk.f32.gmra.mxu3 %vm219_vm1, %v3474_v3 }
 0x20d   : > { %3424 = vmatmul.msk.f32.gmra.mxu1 %vm219_vm1, %v4315_v62  ;;  %3355 = vst.msk [vmem:[%s4015_s12 + $0x168] sm:$0xff] %vm219_vm1, %v1976_v22 }
 0x20e   : > { %v1791_v7 = vpop.f32.mrf.mxu2 }
 0x20f   : > { %v1941_v10 = vpop.f32.mrf.mxu3  ;;  %v1811_v11 = vadd.f32 %v1791_v7, %v1655_v23 }
 0x210   : > { %v1541_v8 = vpop.f32.mrf.mxu0 }
 0x211   : > { %v1961_v15 = vadd.f32 %v1941_v10, %v1811_v11 }
 0x212   : > { %v1657_v24 = vpop.f32.mrf.mxu1 }
 0x213   : > { %v1977_v9 = vadd.f32 %v4418_v13, %v1961_v15  ;;  %3459 = vmatmul.msk.f32.gmra.mxu2 %vm219_vm1, %v4362_v12  ;;  %v1658_v25 = vadd.f32 %v1657_v24, %v1541_v8  ;;  %3408 = vmatmul.msk.f32.gmra.mxu0 %vm219_vm1, %v3473_v58 }
 0x214   : > { %3493 = vmatmul.msk.f32.gmra.mxu3 %vm219_vm1, %v3475_v14 }
 0x215   : > { %3425 = vmatmul.msk.f32.gmra.mxu1 %vm219_vm1, %v4332_v5  ;;  %3356 = vst.msk [vmem:[%s4015_s12 + $0x170] sm:$0xff] %vm219_vm1, %v1977_v9 }
 0x216   : > { %v1794_v62 = vpop.f32.mrf.mxu2 }
 0x217   : > { %v1944_v38 = vpop.f32.mrf.mxu3  ;;  %v1812_v39 = vadd.f32 %v1794_v62, %v1658_v25 }
 0x218   : > { %v2100_v40 = vpop.f32.mrf.mxu0 }
 0x219   : > { %v1962_v30 = vadd.f32 %v1944_v38, %v1812_v39 }
 0x21a   : > { %v2216_v41 = vpop.f32.mrf.mxu1 }
 0x21b   : > { %v1978_v26 = vadd.f32 %v4418_v13, %v1962_v30  ;;  %v2217_v12 = vadd.f32 %v2216_v41, %v2100_v40 }
 0x21d   : > { %3357 = vst.msk [vmem:[%s4015_s12 + $0x178] sm:$0xff] %vm219_vm1, %v1978_v26 }
 0x21e   : > { %v2350_v27 = vpop.f32.mrf.mxu2 }
 0x21f   : > { %v2500_v44 = vpop.f32.mrf.mxu3  ;;  %v2398_v56 = vadd.f32 %v2350_v27, %v2217_v12 }
 0x220   : > { %v2103_v5 = vpop.f32.mrf.mxu0 }
 0x221   : > { %v2548_v46 = vadd.f32 %v2500_v44, %v2398_v56 }
 0x222   : > { %v2219_v32 = vpop.f32.mrf.mxu1 }
 0x223   : > { %v2564_v33 = vadd.f32 %v4418_v13, %v2548_v46  ;;  %v2220_v29 = vadd.f32 %v2219_v32, %v2103_v5 }
 0x225   : > { %3494 = vst.msk [vmem:[%s4015_s12 + $0x180] sm:$0xff] %vm219_vm1, %v2564_v33 }
 0x226   : > { %v2353_v28 = vpop.f32.mrf.mxu2 }
 0x227   : > { %v2503_v49 = vpop.f32.mrf.mxu3  ;;  %v2399_v50 = vadd.f32 %v2353_v28, %v2220_v29 }
 0x228   : > { %v2106_v48 = vpop.f32.mrf.mxu0 }
 0x229   : > { %v2549_v51 = vadd.f32 %v2503_v49, %v2399_v50 }
 0x22a   : > { %v2222_v52 = vpop.f32.mrf.mxu1 }
 0x22b   : > { %v2565_v53 = vadd.f32 %v4418_v13, %v2549_v51  ;;  %v2223_v35 = vadd.f32 %v2222_v52, %v2106_v48 }
 0x22d   : > { %3495 = vst.msk [vmem:[%s4015_s12 + $0x188] sm:$0xff] %vm219_vm1, %v2565_v53 }
 0x22e   : > { %v2356_v31 = vpop.f32.mrf.mxu2 }
 0x22f   : > { %v2506_v16 = vpop.f32.mrf.mxu3  ;;  %v2400_v17 = vadd.f32 %v2356_v31, %v2223_v35 }
 0x230   : > { %v2109_v54 = vpop.f32.mrf.mxu0 }
 0x231   : > { %v2550_v34 = vadd.f32 %v2506_v16, %v2400_v17 }
 0x232   : > { %v2225_v55 = vpop.f32.mrf.mxu1 }
 0x233   : > { %v2566_v57 = vadd.f32 %v4418_v13, %v2550_v34  ;;  %v2226_v36 = vadd.f32 %v2225_v55, %v2109_v54 }
 0x235   : > { %3496 = vst.msk [vmem:[%s4015_s12 + $0x190] sm:$0xff] %vm219_vm1, %v2566_v57 }
 0x236   : > { %v2359_v60 = vpop.f32.mrf.mxu2 }
 0x237   : > { %v2509_v37 = vpop.f32.mrf.mxu3  ;;  %v2401_v45 = vadd.f32 %v2359_v60, %v2226_v36 }
 0x238   : > { %v2112_v59 = vpop.f32.mrf.mxu0 }
 0x239   : > { %v2551_v18 = vadd.f32 %v2509_v37, %v2401_v45 }
 0x23a   : > { %v2228_v19 = vpop.f32.mrf.mxu1 }
 0x23b   : > { %v2567_v61 = vadd.f32 %v4418_v13, %v2551_v18  ;;  %v2229_v58 = vadd.f32 %v2228_v19, %v2112_v59 }
 0x23d   : > { %3497 = vst.msk [vmem:[%s4015_s12 + $0x198] sm:$0xff] %vm219_vm1, %v2567_v61 }
 0x23e   : > { %v2362_v42 = vpop.f32.mrf.mxu2 }
 0x23f   : > { %v2512_v63 = vpop.f32.mrf.mxu3  ;;  %v2402_v0 = vadd.f32 %v2362_v42, %v2229_v58 }
 0x240   : > { %v2115_v20 = vpop.f32.mrf.mxu0 }
 0x241   : > { %v2552_v1 = vadd.f32 %v2512_v63, %v2402_v0 }
 0x242   : > { %v2231_v43 = vpop.f32.mrf.mxu1 }
 0x243   : > { %v2568_v21 = vadd.f32 %v4418_v13, %v2552_v1  ;;  %v2232_v2 = vadd.f32 %v2231_v43, %v2115_v20 }
 0x245   : > { %3498 = vst.msk [vmem:[%s4015_s12 + $0x1a0] sm:$0xff] %vm219_vm1, %v2568_v21 }
 0x246   : > { %v2365_v3 = vpop.f32.mrf.mxu2 }
 0x247   : > { %v2515_v47 = vpop.f32.mrf.mxu3  ;;  %v2403_v4 = vadd.f32 %v2365_v3, %v2232_v2 }
 0x248   : > { %v2118_v22 = vpop.f32.mrf.mxu0 }
 0x249   : > { %v2553_v6 = vadd.f32 %v2515_v47, %v2403_v4 }
 0x24a   : > { %v2234_v23 = vpop.f32.mrf.mxu1 }
 0x24b   : > { %v2569_v7 = vadd.f32 %v4418_v13, %v2553_v6  ;;  %v2235_v10 = vadd.f32 %v2234_v23, %v2118_v22 }
 0x24d   : > { %3499 = vst.msk [vmem:[%s4015_s12 + $0x1a8] sm:$0xff] %vm219_vm1, %v2569_v7 }
 0x24e   : > { %v2368_v11 = vpop.f32.mrf.mxu2 }
 0x24f   : > { %v2518_v14 = vpop.f32.mrf.mxu3  ;;  %v2404_v15 = vadd.f32 %v2368_v11, %v2235_v10 }
 0x250   : > { %v2121_v24 = vpop.f32.mrf.mxu0 }
 0x251   : > { %v2554_v8 = vadd.f32 %v2518_v14, %v2404_v15 }
 0x252   : > { %v2237_v9 = vpop.f32.mrf.mxu1 }
 0x253   : > { %v2570_v25 = vadd.f32 %v4418_v13, %v2554_v8  ;;  %v2238_v62 = vadd.f32 %v2237_v9, %v2121_v24 }
 0x255   : > { %3500 = vst.msk [vmem:[%s4015_s12 + $0x1b0] sm:$0xff] %vm219_vm1, %v2570_v25 }
 0x256   : > { %v2371_v38 = vpop.f32.mrf.mxu2 }
 0x257   : > { %v2521_v39 = vpop.f32.mrf.mxu3  ;;  %v2405_v30 = vadd.f32 %v2371_v38, %v2238_v62 }
 0x258   : > { %v2124_v41 = vpop.f32.mrf.mxu0 }
 0x259   : > { %v2555_v40 = vadd.f32 %v2521_v39, %v2405_v30 }
 0x25a   : > { %v2240_v26 = vpop.f32.mrf.mxu1 }
 0x25b   : > { %v2571_v12 = vadd.f32 %v4418_v13, %v2555_v40  ;;  %v2241_v27 = vadd.f32 %v2240_v26, %v2124_v41 }
 0x25d   : > { %3501 = vst.msk [vmem:[%s4015_s12 + $0x1b8] sm:$0xff] %vm219_vm1, %v2571_v12  ;;  %v2764_v12 = vld [vmem:[%s4015_s12] sm:$0xff] (%p3699_p5) }
 0x25e   : > { %v2374_v44 = vpop.f32.mrf.mxu2  ;;  %2765 = vst [vmem:[%s4592_s4] sm:$0xff] (%p3699_p5), %v2764_v12 }
 0x25f   : > { %v2524_v56 = vpop.f32.mrf.mxu3  ;;  %v2406_v46 = vadd.f32 %v2374_v44, %v2241_v27  ;;  %v2768_v27 = vld [vmem:[%s4015_s12 + $0x10] sm:$0xff] (%p3699_p5)  ;;  %v2770_v44 = vld [vmem:[%s4015_s12 + $0x18] sm:$0xff] (%p3699_p5) }
 0x260   : > { %v2127_v32 = vpop.f32.mrf.mxu0  ;;  %2769 = vst [vmem:[%s4592_s4 + $0x10] sm:$0xff] (%p3699_p5), %v2768_v27 }
 0x261   : > { %v2556_v5 = vadd.f32 %v2524_v56, %v2406_v46  ;;  %v2772_v56 = vld [vmem:[%s4015_s12 + $0x20] sm:$0xff] (%p3699_p5)  ;;  %v2774_v46 = vld [vmem:[%s4015_s12 + $0x28] sm:$0xff] (%p3699_p5)  ;;  %2771 = vst [vmem:[%s4592_s4 + $0x18] sm:$0xff] (%p3699_p5), %v2770_v44 }
 0x262   : > { %v2243_v33 = vpop.f32.mrf.mxu1  ;;  %2773 = vst [vmem:[%s4592_s4 + $0x20] sm:$0xff] (%p3699_p5), %v2772_v56 }
 0x263   : > { %v2572_v29 = vadd.f32 %v4418_v13, %v2556_v5  ;;  %v2244_v28 = vadd.f32 %v2243_v33, %v2127_v32  ;;  %v2776_v5 = vld [vmem:[%s4015_s12 + $0x30] sm:$0xff] (%p3699_p5)  ;;  %v2778_v32 = vld [vmem:[%s4015_s12 + $0x38] sm:$0xff] (%p3699_p5)  ;;  %2775 = vst [vmem:[%s4592_s4 + $0x28] sm:$0xff] (%p3699_p5), %v2774_v46  ;;  %v2780_v33 = vld [vmem:[%s4015_s12 + $0x40] sm:$0xff] (%p3699_p5) }
 0x264   : > { %2777 = vst [vmem:[%s4592_s4 + $0x30] sm:$0xff] (%p3699_p5), %v2776_v5 }
 0x265   : > { %3502 = vst.msk [vmem:[%s4015_s12 + $0x1c0] sm:$0xff] %vm219_vm1, %v2572_v29  ;;  %v2782_v29 = vld [vmem:[%s4015_s12 + $0x48] sm:$0xff] (%p3699_p5) }
 0x266   : > { %v2377_v49 = vpop.f32.mrf.mxu2  ;;  %2779 = vst [vmem:[%s4592_s4 + $0x38] sm:$0xff] (%p3699_p5), %v2778_v32 }
 0x267   : > { %v2527_v50 = vpop.f32.mrf.mxu3  ;;  %v2407_v51 = vadd.f32 %v2377_v49, %v2244_v28  ;;  %v2784_v28 = vld [vmem:[%s4015_s12 + $0x50] sm:$0xff] (%p3699_p5)  ;;  %2781 = vst [vmem:[%s4592_s4 + $0x40] sm:$0xff] (%p3699_p5), %v2780_v33  ;;  %v2786_v49 = vld [vmem:[%s4015_s12 + $0x58] sm:$0xff] (%p3699_p5) }
 0x268   : > { %v2130_v52 = vpop.f32.mrf.mxu0  ;;  %2783 = vst [vmem:[%s4592_s4 + $0x48] sm:$0xff] (%p3699_p5), %v2782_v29 }
 0x269   : > { %v2557_v48 = vadd.f32 %v2527_v50, %v2407_v51  ;;  %v2788_v50 = vld [vmem:[%s4015_s12 + $0x60] sm:$0xff] (%p3699_p5)  ;;  %2785 = vst [vmem:[%s4592_s4 + $0x50] sm:$0xff] (%p3699_p5), %v2784_v28  ;;  %v2790_v51 = vld [vmem:[%s4015_s12 + $0x68] sm:$0xff] (%p3699_p5) }
 0x26a   : > { %v2246_v53 = vpop.f32.mrf.mxu1  ;;  %2787 = vst [vmem:[%s4592_s4 + $0x58] sm:$0xff] (%p3699_p5), %v2786_v49 }
 0x26b   : > { %v2573_v35 = vadd.f32 %v4418_v13, %v2557_v48  ;;  %v2247_v31 = vadd.f32 %v2246_v53, %v2130_v52  ;;  %v2792_v48 = vld [vmem:[%s4015_s12 + $0x70] sm:$0xff] (%p3699_p5)  ;;  %2789 = vst [vmem:[%s4592_s4 + $0x60] sm:$0xff] (%p3699_p5), %v2788_v50  ;;  %v2794_v52 = vld [vmem:[%s4015_s12 + $0x78] sm:$0xff] (%p3699_p5)  ;;  %v2796_v53 = vld [vmem:[%s4015_s12 + $0x80] sm:$0xff] (%p3699_p5) }
 0x26c   : > { %2791 = vst [vmem:[%s4592_s4 + $0x68] sm:$0xff] (%p3699_p5), %v2790_v51 }
 0x26d   : > { %3503 = vst.msk [vmem:[%s4015_s12 + $0x1c8] sm:$0xff] %vm219_vm1, %v2573_v35  ;;  %v2798_v35 = vld [vmem:[%s4015_s12 + $0x88] sm:$0xff] (%p3699_p5) }
 0x26e   : > { %v2380_v16 = vpop.f32.mrf.mxu2  ;;  %2793 = vst [vmem:[%s4592_s4 + $0x70] sm:$0xff] (%p3699_p5), %v2792_v48 }
 0x26f   : > { %v2530_v17 = vpop.f32.mrf.mxu3  ;;  %v2408_v34 = vadd.f32 %v2380_v16, %v2247_v31  ;;  %2795 = vst [vmem:[%s4592_s4 + $0x78] sm:$0xff] (%p3699_p5), %v2794_v52  ;;  %v2800_v31 = vld [vmem:[%s4015_s12 + $0x90] sm:$0xff] (%p3699_p5)  ;;  %v2802_v16 = vld [vmem:[%s4015_s12 + $0x98] sm:$0xff] (%p3699_p5) }
 0x270   : > { %v2133_v55 = vpop.f32.mrf.mxu0  ;;  %2797 = vst [vmem:[%s4592_s4 + $0x100] sm:$0xff] (%p3699_p5), %v2796_v53 }
 0x271   : > { %v2558_v54 = vadd.f32 %v2530_v17, %v2408_v34  ;;  %2799 = vst [vmem:[%s4592_s4 + $0x108] sm:$0xff] (%p3699_p5), %v2798_v35  ;;  %v2804_v17 = vld [vmem:[%s4015_s12 + $0xa0] sm:$0xff] (%p3699_p5)  ;;  %v2806_v34 = vld [vmem:[%s4015_s12 + $0xa8] sm:$0xff] (%p3699_p5) }
 0x272   : > { %v2249_v57 = vpop.f32.mrf.mxu1  ;;  %2801 = vst [vmem:[%s4592_s4 + $0x110] sm:$0xff] (%p3699_p5), %v2800_v31 }
 0x273   : > { %v2574_v36 = vadd.f32 %v4418_v13, %v2558_v54  ;;  %v2250_v60 = vadd.f32 %v2249_v57, %v2133_v55  ;;  %2803 = vst [vmem:[%s4592_s4 + $0x118] sm:$0xff] (%p3699_p5), %v2802_v16  ;;  %v2808_v54 = vld [vmem:[%s4015_s12 + $0xb0] sm:$0xff] (%p3699_p5)  ;;  %v2810_v55 = vld [vmem:[%s4015_s12 + $0xb8] sm:$0xff] (%p3699_p5)  ;;  %v2812_v57 = vld [vmem:[%s4015_s12 + $0xc0] sm:$0xff] (%p3699_p5) }
 0x274   : > { %2805 = vst [vmem:[%s4592_s4 + $0x120] sm:$0xff] (%p3699_p5), %v2804_v17 }
 0x275   : > { %3504 = vst.msk [vmem:[%s4015_s12 + $0x1d0] sm:$0xff] %vm219_vm1, %v2574_v36  ;;  %v2814_v36 = vld [vmem:[%s4015_s12 + $0xc8] sm:$0xff] (%p3699_p5) }
 0x276   : > { %v2383_v37 = vpop.f32.mrf.mxu2  ;;  %2807 = vst [vmem:[%s4592_s4 + $0x128] sm:$0xff] (%p3699_p5), %v2806_v34 }
 0x277   : > { %v2533_v45 = vpop.f32.mrf.mxu3  ;;  %v2409_v18 = vadd.f32 %v2383_v37, %v2250_v60  ;;  %2809 = vst [vmem:[%s4592_s4 + $0x130] sm:$0xff] (%p3699_p5), %v2808_v54  ;;  %v2816_v60 = vld [vmem:[%s4015_s12 + $0xd0] sm:$0xff] (%p3699_p5)  ;;  %v2818_v37 = vld [vmem:[%s4015_s12 + $0xd8] sm:$0xff] (%p3699_p5) }
 0x278   : > { %v2136_v19 = vpop.f32.mrf.mxu0  ;;  %2811 = vst [vmem:[%s4592_s4 + $0x138] sm:$0xff] (%p3699_p5), %v2810_v55 }
 0x279   : > { %v2559_v59 = vadd.f32 %v2533_v45, %v2409_v18  ;;  %2813 = vst [vmem:[%s4592_s4 + $0x140] sm:$0xff] (%p3699_p5), %v2812_v57  ;;  %v2820_v45 = vld [vmem:[%s4015_s12 + $0xe0] sm:$0xff] (%p3699_p5)  ;;  %v2822_v18 = vld [vmem:[%s4015_s12 + $0xe8] sm:$0xff] (%p3699_p5) }
 0x27a   : > { %v2252_v61 = vpop.f32.mrf.mxu1  ;;  %2815 = vst [vmem:[%s4592_s4 + $0x148] sm:$0xff] (%p3699_p5), %v2814_v36 }
 0x27b   : > { %v2575_v58 = vadd.f32 %v4418_v13, %v2559_v59  ;;  %v2253_v42 = vadd.f32 %v2252_v61, %v2136_v19  ;;  %2817 = vst [vmem:[%s4592_s4 + $0x150] sm:$0xff] (%p3699_p5), %v2816_v60  ;;  %v2824_v59 = vld [vmem:[%s4015_s12 + $0xf0] sm:$0xff] (%p3699_p5)  ;;  %v2826_v19 = vld [vmem:[%s4015_s12 + $0xf8] sm:$0xff] (%p3699_p5)  ;;  %v2828_v61 = vld [vmem:[%s4015_s12 + $0x100] sm:$0xff] (%p3699_p5) }
 0x27c   : > { %2819 = vst [vmem:[%s4592_s4 + $0x158] sm:$0xff] (%p3699_p5), %v2818_v37 }
 0x27d   : > { %3505 = vst.msk [vmem:[%s4015_s12 + $0x1d8] sm:$0xff] %vm219_vm1, %v2575_v58  ;;  %v2830_v58 = vld [vmem:[%s4015_s12 + $0x108] sm:$0xff] (%p3699_p5) }
 0x27e   : > { %v2386_v63 = vpop.f32.mrf.mxu2  ;;  %2821 = vst [vmem:[%s4592_s4 + $0x160] sm:$0xff] (%p3699_p5), %v2820_v45 }
 0x27f   : > { %v2536_v0 = vpop.f32.mrf.mxu3  ;;  %v2410_v1 = vadd.f32 %v2386_v63, %v2253_v42  ;;  %2823 = vst [vmem:[%s4592_s4 + $0x168] sm:$0xff] (%p3699_p5), %v2822_v18  ;;  %v2832_v42 = vld [vmem:[%s4015_s12 + $0x110] sm:$0xff] (%p3699_p5)  ;;  %v2834_v63 = vld [vmem:[%s4015_s12 + $0x118] sm:$0xff] (%p3699_p5) }
 0x280   : > { %v2139_v43 = vpop.f32.mrf.mxu0  ;;  %2825 = vst [vmem:[%s4592_s4 + $0x170] sm:$0xff] (%p3699_p5), %v2824_v59 }
 0x281   : > { %v2560_v20 = vadd.f32 %v2536_v0, %v2410_v1  ;;  %2827 = vst [vmem:[%s4592_s4 + $0x178] sm:$0xff] (%p3699_p5), %v2826_v19  ;;  %v2836_v0 = vld [vmem:[%s4015_s12 + $0x120] sm:$0xff] (%p3699_p5)  ;;  %v2838_v1 = vld [vmem:[%s4015_s12 + $0x128] sm:$0xff] (%p3699_p5) }
 0x282   : > { %v2255_v21 = vpop.f32.mrf.mxu1  ;;  %2829 = vst [vmem:[%s4592_s4 + $0x200] sm:$0xff] (%p3699_p5), %v2828_v61 }
 0x283   : > { %v2576_v2 = vadd.f32 %v4418_v13, %v2560_v20  ;;  %v2256_v3 = vadd.f32 %v2255_v21, %v2139_v43  ;;  %2831 = vst [vmem:[%s4592_s4 + $0x208] sm:$0xff] (%p3699_p5), %v2830_v58  ;;  %v2840_v20 = vld [vmem:[%s4015_s12 + $0x130] sm:$0xff] (%p3699_p5)  ;;  %v2842_v43 = vld [vmem:[%s4015_s12 + $0x138] sm:$0xff] (%p3699_p5)  ;;  %v2844_v21 = vld [vmem:[%s4015_s12 + $0x140] sm:$0xff] (%p3699_p5) }
 0x284   : > { %2833 = vst [vmem:[%s4592_s4 + $0x210] sm:$0xff] (%p3699_p5), %v2832_v42 }
 0x285   : > { %3506 = vst.msk [vmem:[%s4015_s12 + $0x1e0] sm:$0xff] %vm219_vm1, %v2576_v2  ;;  %v2846_v2 = vld [vmem:[%s4015_s12 + $0x148] sm:$0xff] (%p3699_p5) }
 0x286   : > { %v2389_v47 = vpop.f32.mrf.mxu2  ;;  %2835 = vst [vmem:[%s4592_s4 + $0x218] sm:$0xff] (%p3699_p5), %v2834_v63 }
 0x287   : > { %v2539_v4 = vpop.f32.mrf.mxu3  ;;  %v2411_v6 = vadd.f32 %v2389_v47, %v2256_v3  ;;  %2837 = vst [vmem:[%s4592_s4 + $0x220] sm:$0xff] (%p3699_p5), %v2836_v0  ;;  %v2848_v3 = vld [vmem:[%s4015_s12 + $0x150] sm:$0xff] (%p3699_p5)  ;;  %v2850_v47 = vld [vmem:[%s4015_s12 + $0x158] sm:$0xff] (%p3699_p5) }
 0x288   : > { %v2142_v23 = vpop.f32.mrf.mxu0  ;;  %2839 = vst [vmem:[%s4592_s4 + $0x228] sm:$0xff] (%p3699_p5), %v2838_v1 }
 0x289   : > { %v2561_v22 = vadd.f32 %v2539_v4, %v2411_v6  ;;  %2841 = vst [vmem:[%s4592_s4 + $0x230] sm:$0xff] (%p3699_p5), %v2840_v20  ;;  %v2852_v4 = vld [vmem:[%s4015_s12 + $0x160] sm:$0xff] (%p3699_p5)  ;;  %v2854_v6 = vld [vmem:[%s4015_s12 + $0x168] sm:$0xff] (%p3699_p5) }
 0x28a   : > { %v2258_v7 = vpop.f32.mrf.mxu1  ;;  %2843 = vst [vmem:[%s4592_s4 + $0x238] sm:$0xff] (%p3699_p5), %v2842_v43 }
 0x28b   : > { %v2577_v10 = vadd.f32 %v4418_v13, %v2561_v22  ;;  %v2259_v11 = vadd.f32 %v2258_v7, %v2142_v23  ;;  %2845 = vst [vmem:[%s4592_s4 + $0x240] sm:$0xff] (%p3699_p5), %v2844_v21  ;;  %v2856_v22 = vld [vmem:[%s4015_s12 + $0x170] sm:$0xff] (%p3699_p5)  ;;  %v2858_v23 = vld [vmem:[%s4015_s12 + $0x178] sm:$0xff] (%p3699_p5)  ;;  %v2860_v7 = vld [vmem:[%s4015_s12 + $0x180] sm:$0xff] (%p3699_p5) }
 0x28c   : > { %2847 = vst [vmem:[%s4592_s4 + $0x248] sm:$0xff] (%p3699_p5), %v2846_v2 }
 0x28d   : > { %3507 = vst.msk [vmem:[%s4015_s12 + $0x1e8] sm:$0xff] %vm219_vm1, %v2577_v10  ;;  %v2862_v10 = vld [vmem:[%s4015_s12 + $0x188] sm:$0xff] (%p3699_p5) }
 0x28e   : > { %v2392_v14 = vpop.f32.mrf.mxu2  ;;  %2849 = vst [vmem:[%s4592_s4 + $0x250] sm:$0xff] (%p3699_p5), %v2848_v3 }
 0x28f   : > { %v2542_v15 = vpop.f32.mrf.mxu3  ;;  %v2412_v8 = vadd.f32 %v2392_v14, %v2259_v11  ;;  %2851 = vst [vmem:[%s4592_s4 + $0x258] sm:$0xff] (%p3699_p5), %v2850_v47  ;;  %v2864_v11 = vld [vmem:[%s4015_s12 + $0x190] sm:$0xff] (%p3699_p5)  ;;  %v2866_v14 = vld [vmem:[%s4015_s12 + $0x198] sm:$0xff] (%p3699_p5) }
 0x290   : > { %v2145_v9 = vpop.f32.mrf.mxu0  ;;  %2853 = vst [vmem:[%s4592_s4 + $0x260] sm:$0xff] (%p3699_p5), %v2852_v4 }
 0x291   : > { %v2562_v24 = vadd.f32 %v2542_v15, %v2412_v8  ;;  %2855 = vst [vmem:[%s4592_s4 + $0x268] sm:$0xff] (%p3699_p5), %v2854_v6  ;;  %v2868_v15 = vld [vmem:[%s4015_s12 + $0x1a0] sm:$0xff] (%p3699_p5)  ;;  %v2870_v8 = vld [vmem:[%s4015_s12 + $0x1a8] sm:$0xff] (%p3699_p5) }
 0x292   : > { %v2261_v25 = vpop.f32.mrf.mxu1  ;;  %2857 = vst [vmem:[%s4592_s4 + $0x270] sm:$0xff] (%p3699_p5), %v2856_v22 }
 0x293   : > { %v2578_v62 = vadd.f32 %v4418_v13, %v2562_v24  ;;  %v2262_v38 = vadd.f32 %v2261_v25, %v2145_v9  ;;  %2859 = vst [vmem:[%s4592_s4 + $0x278] sm:$0xff] (%p3699_p5), %v2858_v23  ;;  %v2872_v24 = vld [vmem:[%s4015_s12 + $0x1b0] sm:$0xff] (%p3699_p5)  ;;  %v2874_v9 = vld [vmem:[%s4015_s12 + $0x1b8] sm:$0xff] (%p3699_p5)  ;;  %v2876_v25 = vld [vmem:[%s4015_s12 + $0x1c0] sm:$0xff] (%p3699_p5) }
 0x294   : > { %2861 = vst [vmem:[%s4592_s4 + $0x300] sm:$0xff] (%p3699_p5), %v2860_v7 }
 0x295   : > { %3508 = vst.msk [vmem:[%s4015_s12 + $0x1f0] sm:$0xff] %vm219_vm1, %v2578_v62  ;;  %v2878_v62 = vld [vmem:[%s4015_s12 + $0x1c8] sm:$0xff] (%p3699_p5) }
 0x296   : > { %v2395_v39 = vpop.f32.mrf.mxu2  ;;  %2863 = vst [vmem:[%s4592_s4 + $0x308] sm:$0xff] (%p3699_p5), %v2862_v10 }
 0x297   : > { %v2545_v30 = vpop.f32.mrf.mxu3  ;;  %v2413_v40 = vadd.f32 %v2395_v39, %v2262_v38  ;;  %2865 = vst [vmem:[%s4592_s4 + $0x310] sm:$0xff] (%p3699_p5), %v2864_v11  ;;  %v2880_v38 = vld [vmem:[%s4015_s12 + $0x1d0] sm:$0xff] (%p3699_p5)  ;;  %v2882_v39 = vld [vmem:[%s4015_s12 + $0x1d8] sm:$0xff] (%p3699_p5) }
 0x298   : > { %2867 = vst [vmem:[%s4592_s4 + $0x318] sm:$0xff] (%p3699_p5), %v2866_v14 }
 0x299   : > { %v2563_v41 = vadd.f32 %v2545_v30, %v2413_v40  ;;  %2603 = sbr.rel (!%p3699_p5) target bundleno = 679 (0x2a7), region = 36  ;;  %2869 = vst [vmem:[%s4592_s4 + $0x320] sm:$0xff] (%p3699_p5), %v2868_v15  ;;  %v2884_v30 = vld [vmem:[%s4015_s12 + $0x1e0] sm:$0xff] (%p3699_p5)  ;;  %v2886_v40 = vld [vmem:[%s4015_s12 + $0x1e8] sm:$0xff] (%p3699_p5) }
 0x29a   : > { %2871 = vst [vmem:[%s4592_s4 + $0x328] sm:$0xff] (%p3699_p5), %v2870_v8 }
 0x29b   : > { %v2579_v26 = vadd.f32 %v4418_v13, %v2563_v41  ;;  %v2766_v13 = vld [vmem:[%s4015_s12 + $0x8] sm:$0xff] (%p3699_p5)  ;;  %2873 = vst [vmem:[%s4592_s4 + $0x330] sm:$0xff] (%p3699_p5), %v2872_v24 }
 0x29c   : > { %2767 = vst [vmem:[%s4592_s4 + $0x8] sm:$0xff] (%p3699_p5), %v2766_v13  ;;  %v2888_v41 = vld [vmem:[%s4015_s12 + $0x1f0] sm:$0xff] (%p3699_p5) }
 0x29d   : > { %3509 = vst.msk [vmem:[%s4015_s12 + $0x1f8] sm:$0xff] %vm219_vm1, %v2579_v26 }
 0x29e   : > { %2875 = vst [vmem:[%s4592_s4 + $0x338] sm:$0xff] %v2874_v9 }
 0x29f   : > { %2877 = vst [vmem:[%s4592_s4 + $0x340] sm:$0xff] %v2876_v25 }
 0x2a0   : > { %2879 = vst [vmem:[%s4592_s4 + $0x348] sm:$0xff] %v2878_v62 }
 0x2a1   : > { %2881 = vst [vmem:[%s4592_s4 + $0x350] sm:$0xff] %v2880_v38 }
 0x2a2   : > { %2883 = vst [vmem:[%s4592_s4 + $0x358] sm:$0xff] %v2882_v39 }
 0x2a3   : > { %2885 = vst [vmem:[%s4592_s4 + $0x360] sm:$0xff] %v2884_v30 }
 0x2a4   : > { %v2890_v26 = vld [vmem:[%s4015_s12 + $0x1f8] sm:$0xff]  ;;  %2887 = vst [vmem:[%s4592_s4 + $0x368] sm:$0xff] %v2886_v40 }
 0x2a5   : > { %2889 = vst [vmem:[%s4592_s4 + $0x370] sm:$0xff] %v2888_v41 }
 0x2a6   : > { %2891 = vst [vmem:[%s4592_s4 + $0x378] sm:$0xff] %v2890_v26 }
 0x2a7 PF: > { %s13_s18 = sadd.s32 1, %s3631_s18   ;;  %s4746_s12 = smov %s3611_s13 }
 0x2a8   : > { %p10_p10 = scmp.ge.s32.totalorder %s13_s18, 6   ;;  %s4747_s13 = smov %s3710_s27 }
 0x2a9   : > { %s4748_s14 = smov %s3623_s16  ;;  %s4749_s15 = smov %s3627_s17 }
 0x2aa   : > { %s4750_s16 = smov %s4753_s19  ;;  %s4751_s17 = smov %s4757_s20 }
 0x2ab   :  { %12 = sbr.rel (!%p10_p10) target bundleno = 4 (0x4), region = 121 }

</bundles_post_ra>
